<compile_context>
chip_gen: v6e
topology: v6e:2x2x1
jax: 0.10.0
libtpu: 0.0.40
codegen_flags: <defaults>
</compile_context>

<pallas_src>
import functools

import jax
import jax.numpy as jnp
from jax import lax
from jax.experimental import pallas as pl
from jax.experimental.pallas import tpu as pltpu

GRAPH_DIM = 768   # graph_model output dim (3 modalities x 256, fixed by the slicing)
MOD_DIM = 256     # per-modality dim


def combined_kernel(lengths_ref,   # (B,)        int32  SMEM (scalar prefetch)
                    x_ref,         # (TILE_M, D) f32
                    wg_ref,        # (D, 768)    bf16
                    bg_ref,        # (1, 768)    f32
                    wc_ref,        # (768, H)    bf16   [w1; w2; w3]
                    bc_ref,        # (1, H)      f32
                    out_ref,       # (TILE_M, H) f32
                    *, T, B, act_dtype):
    tile_m = x_ref.shape[0]

    # ---- graph_model: linear (bf16 MXU inputs, f32 accumulate) + bias + tanh.
    acc = jnp.dot(x_ref[...].astype(jnp.bfloat16), wg_ref[...],
                  preferred_element_type=jnp.float32) + bg_ref[...]
    g = jnp.tanh(acc.astype(act_dtype))           # bf16 on v6e/v7x, f32 on v5e

    # ---- validity mask computed in-kernel from SMEM lengths (no HBM stream):
    # flattened row = b*T + t is valid iff t < lengths[b].  O(B) scalar loop
    # per tile, a few VPU ops per batch -- hidden under the MXU for typical B.
    rows = (pl.program_id(0) * tile_m
            + lax.broadcasted_iota(jnp.int32, (tile_m, 1), 0))

    def body(j, cnt):
        start = j * T
        ok = (rows >= start) & (rows < start + lengths_ref[j])
        return cnt | ok.astype(jnp.int32)

    valid = lax.fori_loop(0, B, body, jnp.zeros((tile_m, 1), jnp.int32))
    g = jnp.where(valid > 0, g, 0.0)              # zero rows with t >= length

    # ---- crossmodal_model: the 3x256 split + three matmuls is algebraically
    # one K=768 matmul against the concatenated weight wc.
    h = jnp.dot(g.astype(jnp.bfloat16), wc_ref[...],
                preferred_element_type=jnp.float32) + bc_ref[...]
    out_ref[...] = jnp.maximum(h, 0.0)


def _round_up(a, b):
    return ((a + b - 1) // b) * b


def _tpu_generation():
    try:
        kind = jax.devices()[0].device_kind.lower()
    except Exception:
        return "other"
    if "v7" in kind or "7x" in kind:
        return "v7x"
    if "v6" in kind:
        return "v6"
    if "v5" in kind:
        return "v5"
    return "other"


# Per-generation: max rows per tile, scoped VMEM limit, bf16 activations (EUP).
_GEN_CONFIG = {
    "v7x":   dict(tile_cap=512,  vmem_limit=40 * 1024 * 1024, bf16_act=True),
    "v6":    dict(tile_cap=1024, vmem_limit=64 * 1024 * 1024, bf16_act=True),
    "v5":    dict(tile_cap=1024, vmem_limit=64 * 1024 * 1024, bf16_act=False),
    "other": dict(tile_cap=512,  vmem_limit=32 * 1024 * 1024, bf16_act=False),
}


def _pick_tile_m(M, D, H, tile_cap, vmem_budget):
    tm = min(tile_cap, _round_up(M, 8))
    # Guarantee >= 2 grid steps so both TensorCores get work under "parallel".
    while pl.cdiv(M, tm) < 2 and tm > 8:
        tm = max(8, _round_up(tm // 2, 8))

    def est_bytes(t):
        x_b = 2 * t * D * 4                                   # f32 input, double-buffered
        o_b = 2 * t * H * 4                                   # f32 output, double-buffered
        w_b = 2 * (D * GRAPH_DIM + GRAPH_DIM * H) * 2         # bf16 weights (worst case 2 bufs)
        b_b = (GRAPH_DIM + H) * 4
        g_b = t * GRAPH_DIM * 4                               # live intermediate (worst case f32)
        return x_b + o_b + w_b + b_b + g_b

    while est_bytes(tm) > vmem_budget and tm > 64:
        tm = max(8, _round_up(tm // 2, 8))
    return tm


def combined_model(features, lengths, params):
    """features: (B, T, D) f32, lengths: (B,) int -> (B, T, H) f32."""
    B, T, D = features.shape
    H = params["w1"].shape[1]
    M = B * T

    # Fuse the three per-modality projections into one (768, H) weight.
    wg = params["wg"].astype(jnp.bfloat16)
    wc = jnp.concatenate([params["w1"], params["w2"], params["w3"]],
                         axis=0).astype(jnp.bfloat16)
    bg = params["bg"].astype(jnp.float32).reshape(1, GRAPH_DIM)
    bc = params["bc"].astype(jnp.float32).reshape(1, H)

    # Flatten (B, T) -> M rows. Stays f32 (cast to bf16 inside the kernel),
    # no padding pass: grid uses pl.cdiv and the last block may be partial
    # (out-of-range rows are computed on padding and never written back).
    x = features.reshape(M, D)
    lens = lengths.astype(jnp.int32)

    cfg = _GEN_CONFIG[_tpu_generation()]
    tile_m = _pick_tile_m(M, D, H, cfg["tile_cap"], int(cfg["vmem_limit"] * 0.75))
    grid = (pl.cdiv(M, tile_m),)
    act_dtype = jnp.bfloat16 if cfg["bf16_act"] else jnp.float32

    kernel = functools.partial(combined_kernel, T=T, B=B, act_dtype=act_dtype)

    def build_call(buffer_weights_once):
        wkw = {"pipeline_mode": pl.Buffered(1)} if buffer_weights_once else {}
        grid_spec = pltpu.PrefetchScalarGridSpec(
            num_scalar_prefetch=1,
            grid=grid,
            in_specs=[
                pl.BlockSpec((tile_m, D), lambda i, _: (i, 0)),               # x rows
                pl.BlockSpec((D, GRAPH_DIM), lambda i, _: (0, 0), **wkw),     # wg
                pl.BlockSpec((1, GRAPH_DIM), lambda i, _: (0, 0), **wkw),     # bg
                pl.BlockSpec((GRAPH_DIM, H), lambda i, _: (0, 0), **wkw),     # wc
                pl.BlockSpec((1, H), lambda i, _: (0, 0), **wkw),             # bc
            ],
            out_specs=pl.BlockSpec((tile_m, H), lambda i, _: (i, 0)),
        )
        return pl.pallas_call(
            kernel,
            out_shape=jax.ShapeDtypeStruct((M, H), jnp.float32),
            grid_spec=grid_spec,
            compiler_params=pltpu.CompilerParams(
                dimension_semantics=("parallel",),       # shard M tiles across TCs
                vmem_limit_bytes=cfg["vmem_limit"],
            ),
        )

    try:
        # Grid-invariant operands: fetched once, single VMEM buffer each.
        out = build_call(True)(lens, x, wg, bg, wc, bc)
    except Exception:
        # Fallback if this JAX build rejects single-buffered pipeline_mode.
        out = build_call(False)(lens, x, wg, bg, wc, bc)

    return out.reshape(B, T, H)


def reference_model(features, lengths, params):
    """Plain-JAX f32 reference mirroring the PyTorch forward."""
    g = jnp.tanh(jnp.einsum("btd,df->btf", features, params["wg"]) + params["bg"])
    T = features.shape[1]
    mask = (jnp.arange(T)[None, :, None] < lengths[:, None, None]).astype(g.dtype)
    g = g * mask
    m1, m2, m3 = g[:, :, :256], g[:, :, 256:512], g[:, :, 512:]
    h = (jnp.einsum("btd,dh->bth", m1, params["w1"])
         + jnp.einsum("btd,dh->bth", m2, params["w2"])
         + jnp.einsum("btd,dh->bth", m3, params["w3"])
         + params["bc"])
    return jnp.maximum(h, 0.0)


def init_params(key, d_in, h_out):
    ks = jax.random.split(key, 4)
    scale_g = 1.0 / jnp.sqrt(d_in)
    scale_c = 1.0 / jnp.sqrt(MOD_DIM)
    return {
        "wg": jax.random.normal(ks[0], (d_in, GRAPH_DIM), jnp.float32) * scale_g,
        "bg": jnp.zeros((1, GRAPH_DIM), jnp.float32),
        "w1": jax.random.normal(ks[1], (MOD_DIM, h_out), jnp.float32) * scale_c,
        "w2": jax.random.normal(ks[2], (MOD_DIM, h_out), jnp.float32) * scale_c,
        "w3": jax.random.normal(ks[3], (MOD_DIM, h_out), jnp.float32) * scale_c,
        "bc": jnp.zeros((1, h_out), jnp.float32),
    }


if __name__ == "__main__":
    B, T, D_IN, H_OUT = 2, 8, 32, 128

    key = jax.random.PRNGKey(0)
    k_x, k_p = jax.random.split(key)

    features = jax.random.normal(k_x, (B, T, D_IN), jnp.float32)
    lengths = jnp.array([8, 5], dtype=jnp.int32)
    params = init_params(k_p, D_IN, H_OUT)

    out = combined_model(features, lengths, params)
    out = jax.block_until_ready(out)

    ref = reference_model(features, lengths, params)
    assert out.shape == (B, T, H_OUT)
    # bf16 MXU inputs / bf16 activations (f32 accumulate) vs f32 reference.
    assert jnp.allclose(out, ref, atol=5e-2, rtol=5e-2), "mismatch vs reference"

    print("KERNEL_OK")
</pallas_src>

<mosaic_0001>
module attributes {stable_mosaic.version = 11 : i64} {
  func.func @combined_kernel(%arg0: i32, %arg1: memref<2xi32, #tpu.memory_space<smem>>, %arg2: memref<8x32xf32, #tpu.memory_space<vmem>>, %arg3: memref<32x768xbf16, #tpu.memory_space<vmem>>, %arg4: memref<1x768xf32, #tpu.memory_space<vmem>>, %arg5: memref<768x128xbf16, #tpu.memory_space<vmem>>, %arg6: memref<1x128xf32, #tpu.memory_space<vmem>>, %arg7: memref<8x128xf32, #tpu.memory_space<vmem>>) attributes {dimension_semantics = [#tpu.dimension_semantics<parallel>], iteration_bounds = array<i64: 2>, scalar_prefetch = 1 : i64, scratch_operands = 0 : i64, tpu.core_type = #tpu.core_type<tc>, window_params = [{transform_indices = @transform_0, window_bounds = array<i64: 8, 32>}, {pipeline_mode = #tpu.pipeline_mode<synchronous>, transform_indices = @transform_1, window_bounds = array<i64: 32, 768>}, {pipeline_mode = #tpu.pipeline_mode<synchronous>, transform_indices = @transform_2, window_bounds = array<i64: 1, 768>}, {pipeline_mode = #tpu.pipeline_mode<synchronous>, transform_indices = @transform_3, window_bounds = array<i64: 768, 128>}, {pipeline_mode = #tpu.pipeline_mode<synchronous>, transform_indices = @transform_4, window_bounds = array<i64: 1, 128>}, {transform_indices = @transform_5, window_bounds = array<i64: 8, 128>}]} {
    %c0 = arith.constant 0 : index
    %c0_0 = arith.constant 0 : index
    %0 = vector.load %arg2[%c0, %c0_0] : memref<8x32xf32, #tpu.memory_space<vmem>>, vector<8x32xf32>
    %1 = arith.truncf %0 : vector<8x32xf32> to vector<8x32xbf16>
    %c0_1 = arith.constant 0 : index
    %c0_2 = arith.constant 0 : index
    %2 = vector.load %arg3[%c0_1, %c0_2] : memref<32x768xbf16, #tpu.memory_space<vmem>>, vector<32x768xbf16>
    %cst = arith.constant dense<0.000000e+00> : vector<8x768xf32>
    %3 = tpu.matmul %1, %2, %cst {dimension_numbers = #tpu.dot_dimension_numbers<[1], [0], [0], [1], [0, 0, 1, 1], [], []>} : vector<8x32xbf16>, vector<32x768xbf16>, vector<8x768xf32> -> vector<8x768xf32>
    %c0_3 = arith.constant 0 : index
    %c0_4 = arith.constant 0 : index
    %4 = vector.load %arg4[%c0_3, %c0_4] : memref<1x768xf32, #tpu.memory_space<vmem>>, vector<1x768xf32>
    %5 = vector.broadcast %4 : vector<1x768xf32> to vector<8x768xf32>
    %6 = arith.addf %3, %5 : vector<8x768xf32>
    %7 = math.tanh %6 : vector<8x768xf32>
    %c8_i32 = arith.constant 8 : i32
    %8 = arith.muli %arg0, %c8_i32 : i32
    %9 = tpu.iota {dimensions = array<i32: 0>} : vector<8x1xi32>
    %10 = vector.broadcast %8 : i32 to vector<8x1xi32>
    %11 = arith.addi %10, %9 : vector<8x1xi32>
    %c0_i32 = arith.constant 0 : i32
    %12 = vector.broadcast %c0_i32 : i32 to vector<8x1xi32>
    %c0_i32_5 = arith.constant 0 : i32
    %c2_i32 = arith.constant 2 : i32
    %13 = arith.addi %c0_i32_5, %c2_i32 : i32
    %c1_i32 = arith.constant 1 : i32
    %14 = scf.for %arg8 = %c0_i32_5 to %13 step %c1_i32 iter_args(%arg9 = %12) -> (vector<8x1xi32>)  : i32 {
      %c8_i32_17 = arith.constant 8 : i32
      %30 = arith.muli %arg8, %c8_i32_17 : i32
      %31 = vector.broadcast %30 : i32 to vector<8x1xi32>
      %32 = arith.cmpi sge, %11, %31 : vector<8x1xi32>
      %33 = arith.index_cast %arg8 : i32 to index
      %34 = memref.load %arg1[%33] : memref<2xi32, #tpu.memory_space<smem>>
      %35 = arith.addi %30, %34 : i32
      %36 = vector.broadcast %35 : i32 to vector<8x1xi32>
      %37 = arith.cmpi slt, %11, %36 : vector<8x1xi32>
      %38 = arith.andi %32, %37 : vector<8x1xi1>
      %39 = arith.extui %38 : vector<8x1xi1> to vector<8x1xi32>
      %40 = arith.ori %arg9, %39 : vector<8x1xi32>
      scf.yield %40 : vector<8x1xi32>
    }
    %c2_i32_6 = arith.constant 2 : i32
    %c0_i32_7 = arith.constant 0 : i32
    %15 = vector.broadcast %c0_i32_7 : i32 to vector<8x1xi32>
    %16 = arith.cmpi sgt, %14, %15 : vector<8x1xi32>
    %cst_8 = arith.constant 0.000000e+00 : f32
    %17 = vector.shape_cast %16 : vector<8x1xi1> to vector<8x1xi1>
    %18 = vector.broadcast %17 : vector<8x1xi1> to vector<8x768xi1>
    %19 = vector.broadcast %cst_8 : f32 to vector<8x768xf32>
    %20 = arith.select %18, %7, %19 : vector<8x768xi1>, vector<8x768xf32>
    %21 = arith.truncf %20 : vector<8x768xf32> to vector<8x768xbf16>
    %c0_9 = arith.constant 0 : index
    %c0_10 = arith.constant 0 : index
    %22 = vector.load %arg5[%c0_9, %c0_10] : memref<768x128xbf16, #tpu.memory_space<vmem>>, vector<768x128xbf16>
    %cst_11 = arith.constant dense<0.000000e+00> : vector<8x128xf32>
    %23 = tpu.matmul %21, %22, %cst_11 {dimension_numbers = #tpu.dot_dimension_numbers<[1], [0], [0], [1], [0, 0, 1, 1], [], []>} : vector<8x768xbf16>, vector<768x128xbf16>, vector<8x128xf32> -> vector<8x128xf32>
    %c0_12 = arith.constant 0 : index
    %c0_13 = arith.constant 0 : index
    %24 = vector.load %arg6[%c0_12, %c0_13] : memref<1x128xf32, #tpu.memory_space<vmem>>, vector<1x128xf32>
    %25 = vector.broadcast %24 : vector<1x128xf32> to vector<8x128xf32>
    %26 = arith.addf %23, %25 : vector<8x128xf32>
    %cst_14 = arith.constant 0.000000e+00 : f32
    %27 = vector.broadcast %cst_14 : f32 to vector<8x128xf32>
    %28 = arith.maximumf %26, %27 : vector<8x128xf32>
    %c0_15 = arith.constant 0 : index
    %c0_16 = arith.constant 0 : index
    %29 = vector.load %arg7[%c0_15, %c0_16] : memref<8x128xf32, #tpu.memory_space<vmem>>, vector<8x128xf32>
    tpu.vector_store %arg7[%c0_15, %c0_16], %28 {strides = array<i32>} : memref<8x128xf32, #tpu.memory_space<vmem>>, vector<8x128xf32>,
    return
  }
  func.func @transform_0(%arg0: i32, %arg1: memref<2xi32, #tpu.memory_space<smem>>) -> (i32, i32) {
    %c0_i32 = arith.constant 0 : i32
    %c0_i32_0 = arith.constant 0 : i32
    return %arg0, %c0_i32 : i32, i32
  }
  func.func @transform_1(%arg0: i32, %arg1: memref<2xi32, #tpu.memory_space<smem>>) -> (i32, i32) {
    %c0_i32 = arith.constant 0 : i32
    %c0_i32_0 = arith.constant 0 : i32
    %c0_i32_1 = arith.constant 0 : i32
    return %c0_i32, %c0_i32_0 : i32, i32
  }
  func.func @transform_2(%arg0: i32, %arg1: memref<2xi32, #tpu.memory_space<smem>>) -> (i32, i32) {
    %c0_i32 = arith.constant 0 : i32
    %c0_i32_0 = arith.constant 0 : i32
    %c0_i32_1 = arith.constant 0 : i32
    return %c0_i32, %c0_i32_0 : i32, i32
  }
  func.func @transform_3(%arg0: i32, %arg1: memref<2xi32, #tpu.memory_space<smem>>) -> (i32, i32) {
    %c0_i32 = arith.constant 0 : i32
    %c0_i32_0 = arith.constant 0 : i32
    %c0_i32_1 = arith.constant 0 : i32
    return %c0_i32, %c0_i32_0 : i32, i32
  }
  func.func @transform_4(%arg0: i32, %arg1: memref<2xi32, #tpu.memory_space<smem>>) -> (i32, i32) {
    %c0_i32 = arith.constant 0 : i32
    %c0_i32_0 = arith.constant 0 : i32
    %c0_i32_1 = arith.constant 0 : i32
    return %c0_i32, %c0_i32_0 : i32, i32
  }
  func.func @transform_5(%arg0: i32, %arg1: memref<2xi32, #tpu.memory_space<smem>>) -> (i32, i32) {
    %c0_i32 = arith.constant 0 : i32
    %c0_i32_0 = arith.constant 0 : i32
    return %arg0, %c0_i32 : i32, i32
  }
}

module attributes {stable_mosaic.version = 11 : i64} {
  func.func @combined_kernel(%arg0: i32, %arg1: memref<2xi32, #tpu.memory_space<smem>>, %arg2: memref<8x32xf32, #tpu.memory_space<vmem>>, %arg3: memref<32x768xbf16, #tpu.memory_space<vmem>>, %arg4: memref<1x768xf32, #tpu.memory_space<vmem>>, %arg5: memref<768x128xbf16, #tpu.memory_space<vmem>>, %arg6: memref<1x128xf32, #tpu.memory_space<vmem>>, %arg7: memref<8x128xf32, #tpu.memory_space<vmem>>) attributes {dimension_semantics = [#tpu.dimension_semantics<parallel>], iteration_bounds = array<i64: 2>, scalar_prefetch = 1 : i64, scratch_operands = 0 : i64, tpu.core_type = #tpu.core_type<tc>, window_params = [{transform_indices = @transform_0, window_bounds = array<i64: 8, 32>}, {pipeline_mode = #tpu.pipeline_mode<synchronous>, transform_indices = @transform_1, window_bounds = array<i64: 32, 768>}, {pipeline_mode = #tpu.pipeline_mode<synchronous>, transform_indices = @transform_2, window_bounds = array<i64: 1, 768>}, {pipeline_mode = #tpu.pipeline_mode<synchronous>, transform_indices = @transform_3, window_bounds = array<i64: 768, 128>}, {pipeline_mode = #tpu.pipeline_mode<synchronous>, transform_indices = @transform_4, window_bounds = array<i64: 1, 128>}, {transform_indices = @transform_5, window_bounds = array<i64: 8, 128>}]} {
    %c0 = arith.constant 0 : index
    %c0_0 = arith.constant 0 : index
    %0 = vector.load %arg2[%c0, %c0_0] : memref<8x32xf32, #tpu.memory_space<vmem>>, vector<8x32xf32>
    %1 = arith.truncf %0 : vector<8x32xf32> to vector<8x32xbf16>
    %c0_1 = arith.constant 0 : index
    %c0_2 = arith.constant 0 : index
    %2 = vector.load %arg3[%c0_1, %c0_2] : memref<32x768xbf16, #tpu.memory_space<vmem>>, vector<32x768xbf16>
    %cst = arith.constant dense<0.000000e+00> : vector<8x768xf32>
    %3 = tpu.matmul %1, %2, %cst {dimension_numbers = #tpu.dot_dimension_numbers<[1], [0], [0], [1], [0, 0, 1, 1], [], []>} : vector<8x32xbf16>, vector<32x768xbf16>, vector<8x768xf32> -> vector<8x768xf32>
    %c0_3 = arith.constant 0 : index
    %c0_4 = arith.constant 0 : index
    %4 = vector.load %arg4[%c0_3, %c0_4] : memref<1x768xf32, #tpu.memory_space<vmem>>, vector<1x768xf32>
    %5 = vector.broadcast %4 : vector<1x768xf32> to vector<8x768xf32>
    %6 = arith.addf %3, %5 : vector<8x768xf32>
    %7 = math.tanh %6 : vector<8x768xf32>
    %c8_i32 = arith.constant 8 : i32
    %8 = arith.muli %arg0, %c8_i32 : i32
    %9 = tpu.iota {dimensions = array<i32: 0>} : vector<8x1xi32>
    %10 = vector.broadcast %8 : i32 to vector<8x1xi32>
    %11 = arith.addi %10, %9 : vector<8x1xi32>
    %c0_i32 = arith.constant 0 : i32
    %12 = vector.broadcast %c0_i32 : i32 to vector<8x1xi32>
    %c0_i32_5 = arith.constant 0 : i32
    %c2_i32 = arith.constant 2 : i32
    %13 = arith.addi %c0_i32_5, %c2_i32 : i32
    %c1_i32 = arith.constant 1 : i32
    %14 = scf.for %arg8 = %c0_i32_5 to %13 step %c1_i32 iter_args(%arg9 = %12) -> (vector<8x1xi32>)  : i32 {
      %c8_i32_17 = arith.constant 8 : i32
      %30 = arith.muli %arg8, %c8_i32_17 : i32
      %31 = vector.broadcast %30 : i32 to vector<8x1xi32>
      %32 = arith.cmpi sge, %11, %31 : vector<8x1xi32>
      %33 = arith.index_cast %arg8 : i32 to index
      %34 = memref.load %arg1[%33] : memref<2xi32, #tpu.memory_space<smem>>
      %35 = arith.addi %30, %34 : i32
      %36 = vector.broadcast %35 : i32 to vector<8x1xi32>
      %37 = arith.cmpi slt, %11, %36 : vector<8x1xi32>
      %38 = arith.andi %32, %37 : vector<8x1xi1>
      %39 = arith.extui %38 : vector<8x1xi1> to vector<8x1xi32>
      %40 = arith.ori %arg9, %39 : vector<8x1xi32>
      scf.yield %40 : vector<8x1xi32>
    }
    %c2_i32_6 = arith.constant 2 : i32
    %c0_i32_7 = arith.constant 0 : i32
    %15 = vector.broadcast %c0_i32_7 : i32 to vector<8x1xi32>
    %16 = arith.cmpi sgt, %14, %15 : vector<8x1xi32>
    %cst_8 = arith.constant 0.000000e+00 : f32
    %17 = vector.shape_cast %16 : vector<8x1xi1> to vector<8x1xi1>
    %18 = vector.broadcast %17 : vector<8x1xi1> to vector<8x768xi1>
    %19 = vector.broadcast %cst_8 : f32 to vector<8x768xf32>
    %20 = arith.select %18, %7, %19 : vector<8x768xi1>, vector<8x768xf32>
    %21 = arith.truncf %20 : vector<8x768xf32> to vector<8x768xbf16>
    %c0_9 = arith.constant 0 : index
    %c0_10 = arith.constant 0 : index
    %22 = vector.load %arg5[%c0_9, %c0_10] : memref<768x128xbf16, #tpu.memory_space<vmem>>, vector<768x128xbf16>
    %cst_11 = arith.constant dense<0.000000e+00> : vector<8x128xf32>
    %23 = tpu.matmul %21, %22, %cst_11 {dimension_numbers = #tpu.dot_dimension_numbers<[1], [0], [0], [1], [0, 0, 1, 1], [], []>} : vector<8x768xbf16>, vector<768x128xbf16>, vector<8x128xf32> -> vector<8x128xf32>
    %c0_12 = arith.constant 0 : index
    %c0_13 = arith.constant 0 : index
    %24 = vector.load %arg6[%c0_12, %c0_13] : memref<1x128xf32, #tpu.memory_space<vmem>>, vector<1x128xf32>
    %25 = vector.broadcast %24 : vector<1x128xf32> to vector<8x128xf32>
    %26 = arith.addf %23, %25 : vector<8x128xf32>
    %cst_14 = arith.constant 0.000000e+00 : f32
    %27 = vector.broadcast %cst_14 : f32 to vector<8x128xf32>
    %28 = arith.maximumf %26, %27 : vector<8x128xf32>
    %c0_15 = arith.constant 0 : index
    %c0_16 = arith.constant 0 : index
    %29 = vector.load %arg7[%c0_15, %c0_16] : memref<8x128xf32, #tpu.memory_space<vmem>>, vector<8x128xf32>
    tpu.vector_store %arg7[%c0_15, %c0_16], %28 {strides = array<i32>} : memref<8x128xf32, #tpu.memory_space<vmem>>, vector<8x128xf32>,
    return
  }
  func.func @transform_0(%arg0: i32, %arg1: memref<2xi32, #tpu.memory_space<smem>>) -> (i32, i32) {
    %c0_i32 = arith.constant 0 : i32
    %c0_i32_0 = arith.constant 0 : i32
    return %arg0, %c0_i32 : i32, i32
  }
  func.func @transform_1(%arg0: i32, %arg1: memref<2xi32, #tpu.memory_space<smem>>) -> (i32, i32) {
    %c0_i32 = arith.constant 0 : i32
    %c0_i32_0 = arith.constant 0 : i32
    %c0_i32_1 = arith.constant 0 : i32
    return %c0_i32, %c0_i32_0 : i32, i32
  }
  func.func @transform_2(%arg0: i32, %arg1: memref<2xi32, #tpu.memory_space<smem>>) -> (i32, i32) {
    %c0_i32 = arith.constant 0 : i32
    %c0_i32_0 = arith.constant 0 : i32
    %c0_i32_1 = arith.constant 0 : i32
    return %c0_i32, %c0_i32_0 : i32, i32
  }
  func.func @transform_3(%arg0: i32, %arg1: memref<2xi32, #tpu.memory_space<smem>>) -> (i32, i32) {
    %c0_i32 = arith.constant 0 : i32
    %c0_i32_0 = arith.constant 0 : i32
    %c0_i32_1 = arith.constant 0 : i32
    return %c0_i32, %c0_i32_0 : i32, i32
  }
  func.func @transform_4(%arg0: i32, %arg1: memref<2xi32, #tpu.memory_space<smem>>) -> (i32, i32) {
    %c0_i32 = arith.constant 0 : i32
    %c0_i32_0 = arith.constant 0 : i32
    %c0_i32_1 = arith.constant 0 : i32
    return %c0_i32, %c0_i32_0 : i32, i32
  }
  func.func @transform_5(%arg0: i32, %arg1: memref<2xi32, #tpu.memory_space<smem>>) -> (i32, i32) {
    %c0_i32 = arith.constant 0 : i32
    %c0_i32_0 = arith.constant 0 : i32
    return %arg0, %c0_i32 : i32, i32
  }
}

</mosaic_0001>

<bundles_post_ra>
// kernel: tpu_custom_call.1
= control target key start
LH: loop header
LB: loop body
LE: loop exit
PB: predicated region body
PF: predicated region fallthrough
CT: control target
= control target key end

     0   :  { %s1750_s21 = smov [#allocation3]   ;;  %s2040_s0 = inlined_call_operand.hbm [shape: s32[2], index: 0, kind: input, shape index: {}]   ;;  %s2041_s1 = inlined_call_operand.hbm [shape: f32[16,32], index: 1, kind: input, shape index: {}]   ;;  %s2042_s2 = inlined_call_operand.hbm [shape: bf16[32,768], index: 2, kind: input, shape index: {}]   ;;  %s2043_s3 = inlined_call_operand.hbm [shape: f32[1,768], index: 3, kind: input, shape index: {}]   ;;  %s2044_s4 = inlined_call_operand.hbm [shape: bf16[768,128], index: 4, kind: input, shape index: {}]   ;;  %s2045_s5 = inlined_call_operand.vmem [shape: f32[1,128], index: 5, kind: input, shape index: {}]   ;;  %s2046_s6 = inlined_call_operand.hbm [shape: f32[16,128], index: 6, kind: output, shape index: {}]  }
   0x1   :  { %12 = dma.hbm_to_smem %s2040_s0, 16, %s1750_s21, [#allocation2] }
   0x2   :  { %1708 = dma.done.wait [#allocation2], 16 }
   0x3   :  { %1709 = vsyncadd [#allocation2], 4294967280 }
   0x4   :  { %14 = sfence }
   0x5   :  { %15 = vsyncpa [#allocation5], 0 }
   0x6   :  { %17 = vsyncpa [#allocation5 + $0x1], 0 }
   0x7   :  { %18 = vsyncpa [#allocation8], 0 }
   0x8   :  { %19 = vsyncpa [#allocation11], 0 }
   0x9   :  { %20 = vsyncpa [#allocation6], 0 }
   0xa   :  { %22 = vsyncpa [#allocation6 + $0x1], 0  ;;  %s1800_s24 = smov 0   ;;  %s1802_s25 = smov 0  }
   0xb   :  { %s1804_s26 = smov 0   ;;  %s1806_s27 = smov 0  }
   0xc LB: > { %s1821_s0 = sadd.s32 4294967295, %s1740_s27   ;;  %s1198_s28 = sadd.s32 4294967294, %s1740_s27   ;;  %s1740_s27 = sphi %s1806_s27, %s2073_s27   ;;  %s1736_s26 = sphi %s1804_s26, %s2072_s26   ;;  %s1732_s25 = sphi %s1802_s25, %s2071_s25   ;;  %s1728_s24 = sphi %s1800_s24, %s2070_s24  }
   0xd   : > { %p48_p0 = scmp.ne.s32.totalorder %s1732_s25, %s1728_s24  ;;  %p2047_p1 = scmp.eq.s32.totalorder %s1821_s0, 0 }
   0xe   : > { %p162_p3 = scmp.eq.s32.totalorder %s1198_s28, 1  ;;  %p1199_p5 = scmp.ge.s32.totalorder %s1740_s27, 1 }
   0xf   : > { %p1830_p4 = por %p2047_p1, %p48_p0  ;;  %p169_p7 = scmp.lt.s32.totalorder %s1740_s27, 3 }
  0x10   : > { %p1835_p6 = por %p162_p3, %p48_p0  ;;  %s1751_s8 = smov [#allocation7]  }
  0x11   : > { %s2051_s29 = scalar_select %p1830_p4, 1, 0 }
  0x12   : > { %s2052_s30 = scalar_select %p1835_p6, 1, 0 }
  0x13   : > { %p1840_p8 = pnand %p1199_p5, %p169_p7  ;;  %s181_s9 = sshll.u32 %s1751_s8, 4  ;;  %s182_s9 = int_to_ptr.vmem [resolvable:$true] %s181_s9 }
  0x14   : > { %s1752_s11 = smov [#allocation9]   ;;  %s1753_s13 = smov [#allocation10]  }
  0x15   : > { %s2053_s7 = scalar_select %p1840_p8, 1, 0 }
  0x16   : > { %p1382_p9 = pneg %p1840_p8  ;;  %s195_s12 = sshll.u32 %s1752_s11, 4  ;;  %s196_s12 = int_to_ptr.vmem [resolvable:$true] %s195_s12 }
  0x17   : > { %s205_s14 = sshll.u32 %s1753_s13, 4  ;;  %s1563_s15 = scalar_lea.vmem %s182_s9, 1536  ;;  %s206_s14 = int_to_ptr.vmem [resolvable:$true] %s205_s14 }
  0x18   : > { %p1849_p11 = pnand %p1382_p9, %p2047_p1  ;;  %p1564_p13 = scmp.ne.s32.totalorder %s182_s9, %s1563_s15 }
  0x19   : > { %p1571_p5 = scmp.lt.s32.totalorder %s182_s9, %s182_s9  ;;  %p1572_p7 = scmp.lt.s32.totalorder %s1563_s15, %s1563_s15 }
  0x1a   : > { %p1554_p12 = pneg %p1849_p11 }
  0x1b   : > { %p1573_p9 = por %p1572_p7, %p1571_p5 }
  0x1c   : > { %p1566_p0 = pnand %p1564_p13, %p1554_p12 }
  0x1e   : > { %p1567_p3 = pneg %p1566_p0 }
  0x20   : > { %p1574_p10 = pnand %p1573_p9, %p1567_p3 }
  0x22   : > { %1577 = shalt.err (!%p1574_p10)
}
  0x23   : > { %s1754_s16 = smov 384   ;;  %s1755_s17 = smov 24  }
  0x24   : > { %1385 = dma.hbm_to_vmem [thread:$0]  (!%p1849_p11), %s2042_s2, 1536, %s182_s9, [#allocation8], %s1754_s16, %s1754_s16, %s1755_s17  }
  0x25   : > { %s1589_s20 = scalar_lea.vmem %s196_s12, 96  ;;  %p1597_p2 = scmp.lt.s32.totalorder %s196_s12, %s196_s12 }
  0x26   : > { %p1590_p1 = scmp.ne.s32.totalorder %s196_s12, %s1589_s20  ;;  %p1598_p6 = scmp.lt.s32.totalorder %s1589_s20, %s1589_s20 }
  0x28   : > { %p1592_p13 = pnand %p1590_p1, %p1554_p12  ;;  %p1599_p5 = por %p1598_p6, %p1597_p2 }
  0x2a   : > { %p1593_p0 = pneg %p1592_p13 }
  0x2c   : > { %p1600_p3 = pnand %p1599_p5, %p1593_p0 }
  0x2e   : > { %1603 = shalt.err (!%p1600_p3)
}
  0x2f   : > { %1388 = dma.hbm_to_vmem [thread:$0]  (!%p1849_p11), %s2043_s3, 96, %s196_s12, [#allocation8]  }
  0x30   : > { %s1615_s23 = scalar_lea.vmem %s206_s14, 6144  ;;  %p1623_p9 = scmp.lt.s32.totalorder %s206_s14, %s206_s14 }
  0x31   : > { %p1616_p10 = scmp.ne.s32.totalorder %s206_s14, %s1615_s23  ;;  %p1624_p13 = scmp.lt.s32.totalorder %s1615_s23, %s1615_s23 }
  0x33   : > { %p1618_p7 = pnand %p1616_p10, %p1554_p12  ;;  %p1625_p4 = por %p1624_p13, %p1623_p9 }
  0x35   : > { %p1619_p1 = pneg %p1618_p7 }
  0x37   : > { %p1626_p2 = pnand %p1625_p4, %p1619_p1 }
  0x39   : > { %1629 = shalt.err (!%p1626_p2)
}
  0x3a   : > { %s1756_s28 = smov 64   ;;  %s1757_s8 = smov 4  }
  0x3b   : > { %1391 = dma.hbm_to_vmem [thread:$0]  (!%p1849_p11), %s2044_s4, 6144, %s206_s14, [#allocation11], %s1756_s28, %s1756_s28, %s1757_s8  }
  0x3c   : > { %s1880_s12 = sadd.s32 1, %s1740_s27   ;;  %s35_s15 = sadd.s32 1, %s1736_s26 }
  0x3d   : > { %s32_s13 = ssub.s32 %s1740_s27, %s1880_s12  ;;  %p42_p6 = scmp.ne.s32.totalorder %s1736_s26, %s1732_s25 }
  0x3e   : > { %p33_p4 = scmp.eq.s32.totalorder %s32_s13, 0  ;;  %p43_p12 = scmp.eq.s32.totalorder %s1740_s27, 0 }
  0x3f   : > { %p1403_p0 = scmp.lt.s32.totalorder %s1740_s27, 2  ;;  %p2055_p3 = scmp.eq.s32.totalorder %s1821_s0, 1 }
  0x40   : > { %s1890_s16 = scalar_select %p33_p4, %s1736_s26, %s35_s15  }
  0x41   : > { %p44_p5 = por %p43_p12, %p42_p6  ;;  %p1894_p10 = por %p2055_p3, %p42_p6 }
  0x42   : > { %s222_s10 = sand.u32 1, %s1736_s26   ;;  %s1205_s18 = sshll.u32 %s1740_s27, 7 }
  0x43   : > { %s2056_s17 = scalar_select %p1894_p10, 1, 0 }
  0x44   : > { %s1204_s14 = sshll.u32 %s222_s10, 3  ;;  %s1903_s21 = scalar_lea.hbm %s2041_s1, %s1205_s18 }
  0x45   : > { %s226_s22 = scalar_lea.vmem [#allocation4], %s1204_s14  ;;  %p1905_p11 = pnand %p1403_p0, %p44_p5 }
  0x46   : > { %s233_s23 = sshll.u32 %s226_s22, 4  ;;  %s223_s8 = scalar_lea.sflag [#allocation5], %s222_s10  ;;  %s234_s23 = int_to_ptr.vmem [resolvable:$true] %s233_s23 }
  0x47   : > { %s1630_s9 = scalar_lea.hbm %s1903_s21, 128  ;;  %p1632_p1 = pneg %p1905_p11 }
  0x48   : > { %p1631_p7 = scmp.ne.s32.totalorder %s1903_s21, %s1630_s9  ;;  %s1635_s15 = scalar_lea.hbm %s2041_s1, 256 }
  0x49   : > { %p1636_p2 = scmp.lt.s32.totalorder %s1903_s21, %s2041_s1  ;;  %p1637_p4 = scmp.lt.s32.totalorder %s1635_s15, %s1630_s9 }
  0x4a   : > { %p1633_p9 = pnand %p1632_p1, %p1631_p7 }
  0x4b   : > { %p1638_p6 = por %p1637_p4, %p1636_p2 }
  0x4c   : > { %p1634_p13 = pneg %p1633_p9 }
  0x4e   : > { %p1639_p12 = pnand %p1638_p6, %p1634_p13 }
  0x50   : > { %1642 = shalt.err (!%p1639_p12)
}
  0x51   : > { %s1643_s19 = scalar_lea.vmem %s234_s23, 128  ;;  %s1758_s10 = smov [#allocation4]  }
  0x52   : > { %p1644_p0 = scmp.ne.s32.totalorder %s234_s23, %s1643_s19  ;;  %s1648_s20 = sshll.u32 %s1758_s10, 4  ;;  %s1649_s20 = int_to_ptr.vmem [resolvable:$false] %s1648_s20 }
  0x53   : > { %s1650_s22 = scalar_lea.vmem %s1649_s20, 256  ;;  %p1651_p7 = scmp.lt.s32.totalorder %s234_s23, %s1649_s20 }
  0x54   : > { %p1646_p5 = pnand %p1644_p0, %p1632_p1  ;;  %p1652_p9 = scmp.lt.s32.totalorder %s1650_s22, %s1643_s19 }
  0x56   : > { %p1647_p3 = pneg %p1646_p5  ;;  %p1653_p10 = por %p1652_p9, %p1651_p7 }
  0x58   : > { %p1654_p8 = pnand %p1653_p10, %p1647_p3 }
  0x5a   : > { %1657 = shalt.err (!%p1654_p8)
}
  0x5b   : > { %1395 = dma.hbm_to_vmem [thread:$0]  (!%p1905_p11), %s1903_s21, 128, %s234_s23, %s223_s8  }
  0x5c   : > { %p2058_p13 = scmp.ne.s32.totalorder %s2053_s7, 0 }
  0x5d   : > { %s1926_s9 = sand.u32 (!%p2058_p13), 1, %s1732_s25   ;;  %p2059_p10 = scmp.ne.s32.totalorder (!%p2058_p13), %s2051_s29, 0 }
  0x5e   : > { %242 = sbr.rel (%p2058_p13) target bundleno = 624 (0x270), region = 40  ;;  %s1207_s11 = sshll.u32 (!%p2058_p13), %s1926_s9, 3 }
  0x5f   : > { %s245_s13 = scalar_lea.sflag (!%p2058_p13), [#allocation5], %s1926_s9  ;;  %s248_s15 = scalar_lea.vmem (!%p2058_p13), [#allocation4], %s1207_s11 }
  0x63   : > { %1711 = dma.done.wait (%p2059_p10), %s245_s13, 128  }
  0x64   : > { %1713 = vsyncadd (%p2059_p10), %s245_s13, 4294967168  ;;  %p2060_p8 = scmp.eq.s32.totalorder %s1821_s0, 0 }
  0x66   : > { %1715 = dma.done.wait (%p2060_p8), [#allocation8], 1632   ;;  %p2061_p11 = pmov %p2060_p8 }
  0x67   : > { %p2062_p1 = pmov %p2060_p8 }
  0x68   : > { %1717 = vsyncadd (%p2061_p11), [#allocation8], 4294965664 }
  0x69   : > { %1719 = dma.done.wait (%p2062_p1), [#allocation11], 6144   ;;  %p2063_p2 = pmov %p2062_p1 }
  0x6a   : > { %v1759_v0 = vmov 0   ;;  %v1466_v1 = vld [vmem:[#allocation7 + $0x34] ss:$24 sps:$4 sm:$0xff]   ;;  %v1468_v2 = vld [vmem:[#allocation7 + $0x30] ss:$24 sps:$4 sm:$0xff]   ;;  %vm394_vm0 = vcmask 261120   ;;  %v304_v15 = vlaneseq }
  0x6b   : > { %1721 = vsyncadd (%p2063_p2), [#allocation11], 4294961152  ;;  %430 = vmatprep.mubr.bf16.mxu0 %v1759_v0  ;;  %410 = vmatprep.subr.bf16.mxu0 %v1466_v1  ;;  %v1469_v3 = vld [vmem:[#allocation7 + $0x4] ss:$24 sps:$4 sm:$0xff]   ;;  %v1471_v4 = vld [vmem:[#allocation7] ss:$24 sps:$4 sm:$0xff]  }
  0x6c   : > { %411 = vmatpush1.bf16.msra.mxu0 %v1468_v2  ;;  %v288_v5 = vld [vmem:[%s248_s15] sm:$0xff]  ;;  %v1477_v9 = vld [vmem:[#allocation7 + $0xc] ss:$24 sps:$4 sm:$0xff]   ;;  %v1475_v10 = vld [vmem:[#allocation7 + $0x8] ss:$24 sps:$4 sm:$0xff]   ;;  %v305_v16 = vshrl.u32 %v304_v15, 7 }
  0x6d   : > { %412 = vmatprep.subr.bf16.mxu0 %v1469_v3  ;;  %v1474_v6 = vld [vmem:[#allocation7 + $0x3c] ss:$24 sps:$4 sm:$0xff]   ;;  %v289_v7 = vpack.c.bf16 %v288_v5, %v288_v5  ;;  %v1472_v8 = vld [vmem:[#allocation7 + $0x38] ss:$24 sps:$4 sm:$0xff]   ;;  %s1227_s29 = sshll.u32 %s1821_s0, 3  ;;  %s1964_s7 = scalar_lea.vmem [#allocation12], %s1207_s11 }
  0x6e   : > { %v1480_v11 = vld [vmem:[#allocation7 + $0x44] ss:$24 sps:$4 sm:$0xff]   ;;  %v1478_v12 = vld [vmem:[#allocation7 + $0x40] ss:$24 sps:$4 sm:$0xff]   ;;  %v1483_v13 = vld [vmem:[#allocation7 + $0x14] ss:$24 sps:$4 sm:$0xff]   ;;  %v530_v17 = vstv %s1227_s29 }
  0x6f   : > { %v1481_v14 = vld [vmem:[#allocation7 + $0x10] ss:$24 sps:$4 sm:$0xff]   ;;  %v1948_v18 = vadd.s32 %v530_v17, %v305_v16  ;;  %v306_v19 = vsub.s32 0, %v305_v16  ;;  %v302_v20 = vld [vmem:[#allocation9] sm:$0x3f]  ;;  %v310_v21 = vsub.s32 1, %v305_v16 }
  0x70   : > { %413 = vmatpush1.bf16.msra.mxu0 %v1471_v4  ;;  %v314_v26 = vsub.s32 2, %v305_v16  ;;  %v318_v29 = vsub.s32 3, %v305_v16  ;;  %v322_v36 = vsub.s32 4, %v305_v16  ;;  %v326_v39 = vsub.s32 5, %v305_v16  ;;  %s1746_s21 = smov 0  }
  0x71   : > { %451 = vmatprep.subr.bf16.mxu0 %v1474_v6  ;;  %v307_v22 = vrot.slane %v302_v20, %v306_v19  ;;  %v311_v23 = vrot.slane %v302_v20, %v310_v21  ;;  %v1742_v56 = vmov 0  }
  0x72   : > { %v315_v31 = vrot.slane %v302_v20, %v314_v26  ;;  %v319_v33 = vrot.slane %v302_v20, %v318_v29  ;;  %v323_v41 = vrot.slane %v302_v20, %v322_v36  ;;  %v327_v43 = vrot.slane %v302_v20, %v326_v39 }
  0x73   : > { %1224 = vmatmul.mubr.msk.bf16.vlgmr.msra.gmra.mxu0 %vm394_vm0, %v289_v7 }
  0x74   : > { %452 = vmatpush1.bf16.msra.mxu0 %v1472_v8  ;;  %471 = vmatprep.mubr.bf16.mxu0 %v1759_v0 }
  0x75   : > { %453 = vmatprep.subr.bf16.mxu0 %v1477_v9 }
  0x78   : > { %454 = vmatpush1.bf16.msra.mxu0 %v1475_v10 }
  0x79   : > { %492 = vmatprep.subr.bf16.mxu0 %v1480_v11 }
  0x7b   : > { %1225 = vmatmul.mubr.msk.bf16.vlgmr.msra.gmra.mxu0 %vm394_vm0, %v289_v7 }
  0x7c   : > { %493 = vmatpush1.bf16.msra.mxu0 %v1478_v12  ;;  %512 = vmatprep.mubr.bf16.mxu0 %v1759_v0 }
  0x7d   : > { %494 = vmatprep.subr.bf16.mxu0 %v1483_v13 }
  0x80   : > { %495 = vmatpush1.bf16.msra.mxu0 %v1481_v14 }
  0x83   : > { %1226 = vmatmul.mubr.msk.bf16.vlgmr.msra.gmra.mxu0 %vm394_vm0, %v289_v7 }
 0x133   : > { %v432_v24 = vpop.f32.mrf.mxu0 }
 0x134   : > { %v433_v25 = vadd.f32 %v432_v24, %v307_v22 }
 0x135   : > { %v434_v27 = vpop.f32.mrf.mxu0 }
 0x136   : > { %1484 = vtanh.f32 %v433_v25  ;;  %v435_v28 = vadd.f32 %v434_v27, %v311_v23 }
 0x137   : > { %v436_v30 = vpop.f32.mrf.mxu0 }
 0x138   : > { %1486 = vtanh.f32 %v435_v28 }
 0x139   : > { %v437_v32 = vpop.f32.mrf.mxu0 }
 0x13b   : > { %v473_v34 = vpop.f32.mrf.mxu0 }
 0x13c   : > { %v474_v35 = vadd.f32 %v473_v34, %v315_v31 }
 0x13d   : > { %v475_v37 = vpop.f32.mrf.mxu0 }
 0x13e   : > { %1488 = vtanh.f32 %v474_v35  ;;  %v476_v38 = vadd.f32 %v475_v37, %v319_v33 }
 0x13f   : > { %v477_v40 = vpop.f32.mrf.mxu0 }
 0x140   : > { %1490 = vtanh.f32 %v476_v38 }
 0x141   : > { %v478_v42 = vpop.f32.mrf.mxu0 }
 0x143   : > { %v1950_v44 = vpop.eup %1484  ;;  %v514_v45 = vpop.f32.mrf.mxu0 }
 0x144   : > { %v515_v46 = vadd.f32 %v514_v45, %v323_v41 }
 0x145   : > { %v1952_v47 = vpop.eup %1486  ;;  %v516_v48 = vpop.f32.mrf.mxu0 }
 0x146   : > { %1492 = vtanh.f32 %v515_v46  ;;  %v517_v49 = vadd.f32 %v516_v48, %v327_v43 }
 0x147   : > { %v518_v50 = vpop.f32.mrf.mxu0 }
 0x148   : > { %1494 = vtanh.f32 %v517_v49 }
 0x149   : > { %v519_v51 = vpop.f32.mrf.mxu0 }
 0x14b   : > { %v1954_v52 = vpop.eup %1488 }
 0x14d   : > { %v1956_v53 = vpop.eup %1490 }
 0x153   : > { %v1958_v54 = vpop.eup %1492 }
 0x155   : > { %v1960_v55 = vpop.eup %1494 }
 0x156 LB: >> { %s1228_s23 = sshll.u32 %s1748_s21, 3  ;;  %s542_s28 = sld [smem:[#allocation3 + %s1748_s21]]  ;;  %v1760_v59 = vmov 0   ;;  %s1748_s21 = sphi %s1746_s21, %s537_s21   ;;  %v1744_v56 = vphi %v1742_v56, %v1743_v56  }
 0x157   : >> { %v540_v57 = vstv %s1228_s23  ;;  %s537_s21 = sadd.s32 1, %s1748_s21  }
 0x158   : >> { %vm541_vm1 = vcmp.ge.s32.totalorder %v1948_v18, %v540_v57  ;;  %p534_p4 = scmp.ge.s32.totalorder %s537_s21, 2  }
 0x159   : > { %v1496_v62 = vld [vmem:[#allocation10 + $0x78] sm:$0xff] (%p534_p4)   ;;  %v1500_v2 = vld [vmem:[#allocation10 + $0x70] sm:$0xff] (%p534_p4)   ;;  %v1504_v6 = vld [vmem:[#allocation10 + $0x68] sm:$0xff] (%p534_p4)   ;;  %v1279_v27 = vpack.c.bf16 (%p534_p4), %v1952_v47, %v1952_v47  ;;  %v1285_v29 = vpack.c.bf16 (%p534_p4), %v1956_v53, %v1956_v53  ;;  %v1282_v31 = vpack.c.bf16 (%p534_p4), %v1950_v44, %v1950_v44  ;;  %v1291_v33 = vpack.c.bf16 (%p534_p4), %v1960_v55, %v1960_v55  ;;  %s1297_s19 = sshll.u32 (%p534_p4), %s1821_s0, 7  ;;  %s1091_s10 = sshll.u32 (%p534_p4), %s1964_s7, 4  ;;  %s1092_s10 = int_to_ptr.vmem [resolvable:$true] %s1091_s10 }
 0x15a   : > { %v1497_v63 = vld [vmem:[#allocation10 + $0x38] sm:$0xff] (%p534_p4)   ;;  %1300 = vmatprep.subr.bf16.mxu1 (%p534_p4), %v1496_v62  ;;  %v1501_v3 = vld [vmem:[#allocation10 + $0x30] sm:$0xff] (%p534_p4)   ;;  %v1505_v7 = vld [vmem:[#allocation10 + $0x28] sm:$0xff] (%p534_p4)   ;;  %v1288_v36 = vpack.c.bf16 (%p534_p4), %v1954_v52, %v1954_v52  ;;  %v1294_v52 = vpack.c.bf16 (%p534_p4), %v1958_v54, %v1958_v54  ;;  %s1089_s11 = scalar_lea.hbm (%p534_p4), %s2046_s6, %s1297_s19  ;;  %s1078_s13 = scalar_lea.sflag (%p534_p4), [#allocation6], %s1926_s9 }
 0x15b   : > { %v1498_v0 = vld [vmem:[#allocation10 + $0xf8] sm:$0xff] (%p534_p4)   ;;  %1301 = vmatpush3.bf16.msra.mxu1 (%p534_p4), %v1497_v63  ;;  %v1502_v4 = vld [vmem:[#allocation10 + $0xf0] sm:$0xff] (%p534_p4)   ;;  %v1506_v8 = vld [vmem:[#allocation10 + $0xe8] sm:$0xff] (%p534_p4)   ;;  %s1658_s15 = scalar_lea.vmem (%p534_p4), %s1092_s10, 128  ;;  %p2067_p12 = scmp.ne.s32.totalorder (%p534_p4), %s2056_s17, 0 }
 0x15c   : >> { %s543_s8 = sadd.s32 %s1228_s23, %s542_s28  ;;  %v1499_v1 = vld [vmem:[#allocation10 + $0xb8] sm:$0xff] (%p534_p4)   ;;  %1322 = vmatprep.subr.bf16.mxu0 (%p534_p4), %v1498_v0  ;;  %1302 = vmatprep.subr.bf16.mxu1 (%p534_p4), %v1500_v2  ;;  %v1503_v5 = vld [vmem:[#allocation10 + $0xb0] sm:$0xff] (%p534_p4)   ;;  %v1507_v9 = vld [vmem:[#allocation10 + $0xa8] sm:$0xff] (%p534_p4)   ;;  %p1659_p6 = scmp.ne.s32.totalorder (%p534_p4), %s1092_s10, %s1658_s15 }
 0x15d   : >> { %v544_v58 = vstv %s543_s8  ;;  %1323 = vmatpush3.bf16.msra.mxu0 (%p534_p4), %v1499_v1  ;;  %v1508_v10 = vld [vmem:[#allocation10 + $0x60] sm:$0xff] (%p534_p4)   ;;  %v1512_v14 = vld [vmem:[#allocation10 + $0x58] sm:$0xff] (%p534_p4)   ;;  %v1517_v19 = vld [vmem:[#allocation10 + $0x10] sm:$0xff] (%p534_p4)   ;;  %s1761_s29 = smov (%p534_p4), [#allocation12]  }
 0x15e   : >> { %vm545_vm2 = vcmp.lt.s32.totalorder %v1948_v18, %v544_v58  ;;  %1324 = vmatprep.subr.bf16.mxu0 (%p534_p4), %v1502_v4  ;;  %v1509_v11 = vld [vmem:[#allocation10 + $0x20] sm:$0xff] (%p534_p4)   ;;  %v1513_v15 = vld [vmem:[#allocation10 + $0x18] sm:$0xff] (%p534_p4)   ;;  %v1516_v18 = vld [vmem:[#allocation10 + $0x50] sm:$0xff] (%p534_p4)   ;;  %p1660_p0 = pnand (%p534_p4), %p1659_p6, %p2067_p12  ;;  %s1662_s21 = sshll.u32 (%p534_p4), %s1761_s29, 4  ;;  %s1663_s21 = int_to_ptr.vmem [resolvable:$false] %s1662_s21 }
 0x15f   : >> { %vm546_vm3 = vmand %vm541_vm1, %vm545_vm2  ;;  %1303 = vmatpush3.bf16.msra.mxu1 (%p534_p4), %v1501_v3  ;;  %v1510_v12 = vld [vmem:[#allocation10 + $0xe0] sm:$0xff] (%p534_p4)   ;;  %v1514_v16 = vld [vmem:[#allocation10 + $0xd8] sm:$0xff] (%p534_p4)   ;;  %s1664_s0 = scalar_lea.vmem (%p534_p4), %s1663_s21, 256  ;;  %p1665_p3 = scmp.lt.s32.totalorder (%p534_p4), %s1092_s10, %s1663_s21 }
 0x160   : >> { %v547_v60 = vsel %vm546_vm3, 1, %v1760_v59  ;;  %536 = sbr.rel (!%p534_p4) target bundleno = 342 (0x156), region = 104  ;;  %1304 = vmatprep.subr.bf16.mxu1 (%p534_p4), %v1504_v6  ;;  %v1511_v13 = vld [vmem:[#allocation10 + $0xa0] sm:$0xff] (%p534_p4)   ;;  %v1515_v17 = vld [vmem:[#allocation10 + $0x98] sm:$0xff] (%p534_p4)   ;;  %v1518_v20 = vld [vmem:[#allocation10 + $0xd0] sm:$0xff] (%p534_p4)   ;;  %p1661_p5 = pneg (%p534_p4), %p1660_p0 }
 0x161   : >> { %v1968_v56 = vor.u32 %v1744_v56, %v547_v60   ;;  %1325 = vmatpush3.bf16.msra.mxu0 (%p534_p4), %v1503_v5  ;;  %v1519_v21 = vld [vmem:[#allocation10 + $0x90] sm:$0xff] (%p534_p4)   ;;  %v1520_v22 = vld [vmem:[#allocation10 + $0x48] sm:$0xff] (%p534_p4)   ;;  %v1524_v26 = vld [vmem:[#allocation10 + $0x40] sm:$0xff] (%p534_p4)   ;;  %p1666_p7 = scmp.lt.s32.totalorder (%p534_p4), %s1664_s0, %s1658_s15 }
 0x162   : > { %1326 = vmatprep.subr.bf16.mxu0 (%p534_p4), %v1506_v8  ;;  %v1521_v23 = vld [vmem:[#allocation10 + $0x8] sm:$0xff] (%p534_p4)   ;;  %v1525_v28 = vld [vmem:[#allocation10] sm:$0xff] (%p534_p4)   ;;  %v1528_v35 = vld [vmem:[#allocation10 + $0x178] sm:$0xff] (%p534_p4)  }
 0x163   : >> { %v2064_v61 = vmov %v1968_v56  ;;  %1305 = vmatpush3.bf16.msra.mxu1 (%p534_p4), %v1505_v7  ;;  %v1522_v24 = vld [vmem:[#allocation10 + $0xc8] sm:$0xff] (%p534_p4)   ;;  %v1526_v30 = vld [vmem:[#allocation10 + $0xc0] sm:$0xff] (%p534_p4)   ;;  %v1529_v37 = vld [vmem:[#allocation10 + $0x138] sm:$0xff] (%p534_p4)   ;;  %p1667_p9 = por (%p534_p4), %p1666_p7, %p1665_p3 }
 0x164   : >> { %v1743_v56 = vmov %v2064_v61   ;;  %1306 = vmatprep.subr.bf16.mxu1 (%p534_p4), %v1508_v10  ;;  %v1523_v25 = vld [vmem:[#allocation10 + $0x88] sm:$0xff] (%p534_p4)   ;;  %vm549_vm4 = vcmp.gt.s32.totalorder (%p534_p4), %v2064_v61, 0  ;;  %v1527_v34 = vld [vmem:[#allocation10 + $0x80] sm:$0xff] (%p534_p4)   ;;  %v1530_v38 = vld [vmem:[#allocation10 + $0x170] sm:$0xff] (%p534_p4)  }
 0x165   : > { %1327 = vmatpush3.bf16.msra.mxu0 %v1507_v9  ;;  %vm1978_vm5 = vmpackc.low %vm549_vm4, %vm549_vm4  ;;  %v1531_v39 = vld [vmem:[#allocation10 + $0x130] sm:$0xff]   ;;  %v1532_v40 = vld [vmem:[#allocation10 + $0x168] sm:$0xff]   ;;  %p1668_p13 = pnand %p1667_p9, %p1661_p5 }
 0x166   : > { %1328 = vmatprep.subr.bf16.mxu0 %v1510_v12  ;;  %1280 = vmatprep.mubr.msk.bf16.mxu1 %vm1978_vm5, %v1279_v27  ;;  %v1533_v41 = vld [vmem:[#allocation10 + $0x128] sm:$0xff]   ;;  %v1534_v42 = vld [vmem:[#allocation10 + $0x160] sm:$0xff]   ;;  %v1536_v44 = vld [vmem:[#allocation10 + $0x158] sm:$0xff]  }
 0x167   : > { %1307 = vmatpush3.bf16.msra.mxu1 %v1509_v11  ;;  %1286 = vmatprep.mubr.msk.bf16.mxu0 %vm1978_vm5, %v1285_v29  ;;  %v1535_v43 = vld [vmem:[#allocation10 + $0x120] sm:$0xff]   ;;  %v1537_v45 = vld [vmem:[#allocation10 + $0x118] sm:$0xff]   ;;  %v1538_v46 = vld [vmem:[#allocation10 + $0x150] sm:$0xff]  }
 0x168   : > { %1308 = vmatprep.subr.bf16.mxu1 %v1512_v14  ;;  %v1539_v47 = vld [vmem:[#allocation10 + $0x110] sm:$0xff]   ;;  %v1540_v48 = vld [vmem:[#allocation10 + $0x148] sm:$0xff]   ;;  %v1542_v50 = vld [vmem:[#allocation10 + $0x140] sm:$0xff]  }
 0x169   : > { %1329 = vmatpush3.bf16.msra.mxu0 %v1511_v13  ;;  %v1541_v49 = vld [vmem:[#allocation10 + $0x108] sm:$0xff]   ;;  %v1543_v51 = vld [vmem:[#allocation10 + $0x100] sm:$0xff]  }
 0x16a   : > { %1330 = vmatprep.subr.bf16.mxu0 %v1514_v16  ;;  %v1229_v54 = vld [vmem:[%s2045_s5] ss:$0 sm:$0xff] }
 0x16b   : > { %1309 = vmatpush3.bf16.msra.mxu1 %v1513_v15 }
 0x16c   : > { %1310 = vmatprep.subr.bf16.mxu1 %v1516_v18 }
 0x16d   : > { %1331 = vmatpush3.bf16.msra.mxu0 %v1515_v17 }
 0x16e   : > { %1332 = vmatprep.subr.bf16.mxu0 %v1518_v20 }
 0x16f   : > { %1311 = vmatpush3.bf16.msra.mxu1 %v1517_v19 }
 0x170   : > { %1312 = vmatprep.subr.bf16.mxu1 %v1520_v22 }
 0x171   : > { %1333 = vmatpush3.bf16.msra.mxu0 %v1519_v21 }
 0x172   : > { %1334 = vmatprep.subr.bf16.mxu0 %v1522_v24 }
 0x173   : > { %1313 = vmatpush3.bf16.msra.mxu1 %v1521_v23 }
 0x174   : > { %1314 = vmatprep.subr.bf16.mxu1 %v1524_v26 }
 0x175   : > { %1335 = vmatpush3.bf16.msra.mxu0 %v1523_v25 }
 0x176   : > { %1336 = vmatprep.subr.bf16.mxu0 %v1526_v30 }
 0x177   : > { %1315 = vmatpush3.bf16.msra.mxu1 %v1525_v28 }
 0x178   : > { %1344 = vmatprep.subr.bf16.mxu1 %v1528_v35 }
 0x179   : > { %1337 = vmatpush3.bf16.msra.mxu0 %v1527_v34 }
 0x17a   : > { %1283 = vmatmul.mubr.msk.bf16.vlgmr.msra.gmra.mxu1 %vm1978_vm5, %v1282_v31 }
 0x17b   : > { %1292 = vmatprep.mubr.msk.bf16.mxu1 %vm1978_vm5, %v1291_v33  ;;  %1345 = vmatpush3.bf16.msra.mxu1 %v1529_v37 }
 0x17c   : > { %1289 = vmatmul.mubr.msk.bf16.vlgmr.msra.gmra.mxu0 %vm1978_vm5, %v1288_v36  ;;  %1346 = vmatprep.subr.bf16.mxu1 %v1530_v38 }
 0x17f   : > { %1347 = vmatpush3.bf16.msra.mxu1 %v1531_v39 }
 0x180   : > { %1348 = vmatprep.subr.bf16.mxu1 %v1532_v40 }
 0x183   : > { %1349 = vmatpush3.bf16.msra.mxu1 %v1533_v41 }
 0x184   : > { %1350 = vmatprep.subr.bf16.mxu1 %v1534_v42 }
 0x187   : > { %1351 = vmatpush3.bf16.msra.mxu1 %v1535_v43 }
 0x188   : > { %1352 = vmatprep.subr.bf16.mxu1 %v1536_v44 }
 0x18b   : > { %1353 = vmatpush3.bf16.msra.mxu1 %v1537_v45 }
 0x18c   : > { %1354 = vmatprep.subr.bf16.mxu1 %v1538_v46 }
 0x18f   : > { %1355 = vmatpush3.bf16.msra.mxu1 %v1539_v47 }
 0x190   : > { %1356 = vmatprep.subr.bf16.mxu1 %v1540_v48 }
 0x193   : > { %1357 = vmatpush3.bf16.msra.mxu1 %v1541_v49 }
 0x194   : > { %1358 = vmatprep.subr.bf16.mxu1 %v1542_v50 }
 0x197   : > { %1359 = vmatpush3.bf16.msra.mxu1 %v1543_v51 }
 0x19a   : > { %1295 = vmatmul.mubr.msk.bf16.vlgmr.msra.gmra.mxu1 %vm1978_vm5, %v1294_v52 }
 0x23a   : > { %v1316_v53 = vpop.f32.mrf.mxu1 }
 0x23c   : > { %v1317_v55 = vpop.f32.mrf.mxu1  ;;  %v1338_v56 = vpop.f32.mrf.mxu0 }
 0x23d   : > { %v1318_v62 = vadd.f32 %v1317_v55, %v1316_v53 }
 0x23e   : > { %v1319_v57 = vpop.f32.mrf.mxu1  ;;  %v1339_v58 = vpop.f32.mrf.mxu0 }
 0x23f   : > { %v990_v63 = vadd.f32 %v1318_v62, %v1229_v54  ;;  %v1340_v0 = vadd.f32 %v1339_v58, %v1338_v56 }
 0x240   : > { %v1320_v59 = vpop.f32.mrf.mxu1  ;;  %v1341_v60 = vpop.f32.mrf.mxu0 }
 0x241   : > { %v1030_v3 = vadd.f32 %v1340_v0, %v990_v63 }
 0x242   : > { %v1342_v61 = vpop.f32.mrf.mxu0 }
 0x25a   : > { %v1360_v1 = vpop.f32.mrf.mxu1 }
 0x25c   : > { %v1361_v2 = vpop.f32.mrf.mxu1 }
 0x25d   : > { %v1362_v4 = vadd.f32 %v1361_v2, %v1360_v1 }
 0x25e   : > { %v1363_v5 = vpop.f32.mrf.mxu1 }
 0x25f   : > { %v1070_v6 = vadd.f32 %v1362_v4, %v1030_v3 }
 0x260   : > { %v1364_v7 = vpop.f32.mrf.mxu1 }
 0x261   : > { %v1075_v8 = vmax.f32 %v1070_v6, 0.0 }
 0x263   : > { %1076 = vst [vmem:[%s1964_s7] sm:$0xff] %v1075_v8 }
 0x264   : > { %1671 = shalt.err (!%p1668_p13)
}
 0x265   : > { %s1672_s23 = scalar_lea.hbm %s1089_s11, 128  ;;  %s1676_s28 = scalar_lea.hbm %s2046_s6, 256 }
 0x266   : > { %p1673_p10 = scmp.ne.s32.totalorder %s1089_s11, %s1672_s23  ;;  %p1677_p1 = scmp.lt.s32.totalorder %s1089_s11, %s2046_s6 }
 0x267   : > { %p1678_p2 = scmp.lt.s32.totalorder %s1676_s28, %s1672_s23 }
 0x268   : > { %p1674_p8 = pnand %p1673_p10, %p2067_p12 }
 0x269   : > { %p1679_p4 = por %p1678_p2, %p1677_p1 }
 0x26a   : > { %p1675_p11 = pneg %p1674_p8 }
 0x26c   : > { %p1680_p6 = pnand %p1679_p4, %p1675_p11 }
 0x26e   : > { %1683 = shalt.err (!%p1680_p6)
}
 0x26f   : > { %1380 = dma.vmem_to_hbm [thread:$0]  (%p2067_p12), %s1092_s10, 128, %s1089_s11, %s1078_s13  }
 0x270 PF: > { %s1103_s14 = sand.u32 1, %s1728_s24   ;;  %p2068_p0 = scmp.ne.s32.totalorder %s2052_s30, 0 }
 0x271   : > { %p2069_p5 = scmp.ge.s32.totalorder %s1740_s27, 2  ;;  %s1104_s19 = scalar_lea.sflag [#allocation6], %s1103_s14 }
 0x273   : > { %p1397_p3 = pnand %p2069_p5, %p2068_p0 }
 0x275   : > { %p1398_p7 = pneg %p1397_p3 }
 0x277   : > { %1723 = dma.done.wait (%p1398_p7), %s1104_s19, 128  }
 0x278   : > { %1725 = vsyncadd (%p1398_p7), %s1104_s19, 4294967168  ;;  %p25_p9 = scmp.ge.s32.totalorder %s1880_s12, 4   ;;  %s2070_s24 = smov %s1732_s25 }
 0x279   : > { %s2071_s25 = smov %s1736_s26  ;;  %s2072_s26 = smov %s1890_s16 }
 0x27a   : > { %s2073_s27 = smov %s1880_s12  ;;  %27 = sbr.rel (!%p25_p9) target bundleno = 12 (0xc), region = 115 }
 0x27f   :  { %1109 = vsyncpa [#allocation5], 1 }
 0x280   :  { %1111 = vsyncpa [#allocation5 + $0x1], 1 }
 0x281   :  { %1112 = vsyncpa [#allocation8], 1 }
 0x282   :  { %1113 = vsyncpa [#allocation11], 1 }
 0x283   :  { %1114 = vsyncpa [#allocation6], 1 }
 0x284   :  { %1116 = vsyncpa [#allocation6 + $0x1], 1 }

// kernel: tpu_custom_call.1
= control target key start
LH: loop header
LB: loop body
LE: loop exit
PB: predicated region body
PF: predicated region fallthrough
CT: control target
= control target key end

     0   :  { %s1750_s21 = smov [#allocation3]   ;;  %s2040_s0 = inlined_call_operand.hbm [shape: s32[2], index: 0, kind: input, shape index: {}]   ;;  %s2041_s1 = inlined_call_operand.hbm [shape: f32[16,32], index: 1, kind: input, shape index: {}]   ;;  %s2042_s2 = inlined_call_operand.hbm [shape: bf16[32,768], index: 2, kind: input, shape index: {}]   ;;  %s2043_s3 = inlined_call_operand.hbm [shape: f32[1,768], index: 3, kind: input, shape index: {}]   ;;  %s2044_s4 = inlined_call_operand.hbm [shape: bf16[768,128], index: 4, kind: input, shape index: {}]   ;;  %s2045_s5 = inlined_call_operand.vmem [shape: f32[1,128], index: 5, kind: input, shape index: {}]   ;;  %s2046_s6 = inlined_call_operand.hbm [shape: f32[16,128], index: 6, kind: output, shape index: {}]  }
   0x1   :  { %12 = dma.hbm_to_smem %s2040_s0, 16, %s1750_s21, [#allocation2] }
   0x2   :  { %1708 = dma.done.wait [#allocation2], 16 }
   0x3   :  { %1709 = vsyncadd [#allocation2], 4294967280 }
   0x4   :  { %14 = sfence }
   0x5   :  { %15 = vsyncpa [#allocation5], 0 }
   0x6   :  { %17 = vsyncpa [#allocation5 + $0x1], 0 }
   0x7   :  { %18 = vsyncpa [#allocation8], 0 }
   0x8   :  { %19 = vsyncpa [#allocation11], 0 }
   0x9   :  { %20 = vsyncpa [#allocation6], 0 }
   0xa   :  { %22 = vsyncpa [#allocation6 + $0x1], 0  ;;  %s1800_s24 = smov 0   ;;  %s1802_s25 = smov 0  }
   0xb   :  { %s1804_s26 = smov 0   ;;  %s1806_s27 = smov 0  }
   0xc LB: > { %s1821_s0 = sadd.s32 4294967295, %s1740_s27   ;;  %s1198_s28 = sadd.s32 4294967294, %s1740_s27   ;;  %s1740_s27 = sphi %s1806_s27, %s2073_s27   ;;  %s1736_s26 = sphi %s1804_s26, %s2072_s26   ;;  %s1732_s25 = sphi %s1802_s25, %s2071_s25   ;;  %s1728_s24 = sphi %s1800_s24, %s2070_s24  }
   0xd   : > { %p48_p0 = scmp.ne.s32.totalorder %s1732_s25, %s1728_s24  ;;  %p2047_p1 = scmp.eq.s32.totalorder %s1821_s0, 0 }
   0xe   : > { %p162_p3 = scmp.eq.s32.totalorder %s1198_s28, 1  ;;  %p1199_p5 = scmp.ge.s32.totalorder %s1740_s27, 1 }
   0xf   : > { %p1830_p4 = por %p2047_p1, %p48_p0  ;;  %p169_p7 = scmp.lt.s32.totalorder %s1740_s27, 3 }
  0x10   : > { %p1835_p6 = por %p162_p3, %p48_p0  ;;  %s1751_s8 = smov [#allocation7]  }
  0x11   : > { %s2051_s29 = scalar_select %p1830_p4, 1, 0 }
  0x12   : > { %s2052_s30 = scalar_select %p1835_p6, 1, 0 }
  0x13   : > { %p1840_p8 = pnand %p1199_p5, %p169_p7  ;;  %s181_s9 = sshll.u32 %s1751_s8, 4  ;;  %s182_s9 = int_to_ptr.vmem [resolvable:$true] %s181_s9 }
  0x14   : > { %s1752_s11 = smov [#allocation9]   ;;  %s1753_s13 = smov [#allocation10]  }
  0x15   : > { %s2053_s7 = scalar_select %p1840_p8, 1, 0 }
  0x16   : > { %p1382_p9 = pneg %p1840_p8  ;;  %s195_s12 = sshll.u32 %s1752_s11, 4  ;;  %s196_s12 = int_to_ptr.vmem [resolvable:$true] %s195_s12 }
  0x17   : > { %s205_s14 = sshll.u32 %s1753_s13, 4  ;;  %s1563_s15 = scalar_lea.vmem %s182_s9, 1536  ;;  %s206_s14 = int_to_ptr.vmem [resolvable:$true] %s205_s14 }
  0x18   : > { %p1849_p11 = pnand %p1382_p9, %p2047_p1  ;;  %p1564_p13 = scmp.ne.s32.totalorder %s182_s9, %s1563_s15 }
  0x19   : > { %p1571_p5 = scmp.lt.s32.totalorder %s182_s9, %s182_s9  ;;  %p1572_p7 = scmp.lt.s32.totalorder %s1563_s15, %s1563_s15 }
  0x1a   : > { %p1554_p12 = pneg %p1849_p11 }
  0x1b   : > { %p1573_p9 = por %p1572_p7, %p1571_p5 }
  0x1c   : > { %p1566_p0 = pnand %p1564_p13, %p1554_p12 }
  0x1e   : > { %p1567_p3 = pneg %p1566_p0 }
  0x20   : > { %p1574_p10 = pnand %p1573_p9, %p1567_p3 }
  0x22   : > { %1577 = shalt.err (!%p1574_p10)
}
  0x23   : > { %s1754_s16 = smov 384   ;;  %s1755_s17 = smov 24  }
  0x24   : > { %1385 = dma.hbm_to_vmem [thread:$0]  (!%p1849_p11), %s2042_s2, 1536, %s182_s9, [#allocation8], %s1754_s16, %s1754_s16, %s1755_s17  }
  0x25   : > { %s1589_s20 = scalar_lea.vmem %s196_s12, 96  ;;  %p1597_p2 = scmp.lt.s32.totalorder %s196_s12, %s196_s12 }
  0x26   : > { %p1590_p1 = scmp.ne.s32.totalorder %s196_s12, %s1589_s20  ;;  %p1598_p6 = scmp.lt.s32.totalorder %s1589_s20, %s1589_s20 }
  0x28   : > { %p1592_p13 = pnand %p1590_p1, %p1554_p12  ;;  %p1599_p5 = por %p1598_p6, %p1597_p2 }
  0x2a   : > { %p1593_p0 = pneg %p1592_p13 }
  0x2c   : > { %p1600_p3 = pnand %p1599_p5, %p1593_p0 }
  0x2e   : > { %1603 = shalt.err (!%p1600_p3)
}
  0x2f   : > { %1388 = dma.hbm_to_vmem [thread:$0]  (!%p1849_p11), %s2043_s3, 96, %s196_s12, [#allocation8]  }
  0x30   : > { %s1615_s23 = scalar_lea.vmem %s206_s14, 6144  ;;  %p1623_p9 = scmp.lt.s32.totalorder %s206_s14, %s206_s14 }
  0x31   : > { %p1616_p10 = scmp.ne.s32.totalorder %s206_s14, %s1615_s23  ;;  %p1624_p13 = scmp.lt.s32.totalorder %s1615_s23, %s1615_s23 }
  0x33   : > { %p1618_p7 = pnand %p1616_p10, %p1554_p12  ;;  %p1625_p4 = por %p1624_p13, %p1623_p9 }
  0x35   : > { %p1619_p1 = pneg %p1618_p7 }
  0x37   : > { %p1626_p2 = pnand %p1625_p4, %p1619_p1 }
  0x39   : > { %1629 = shalt.err (!%p1626_p2)
}
  0x3a   : > { %s1756_s28 = smov 64   ;;  %s1757_s8 = smov 4  }
  0x3b   : > { %1391 = dma.hbm_to_vmem [thread:$0]  (!%p1849_p11), %s2044_s4, 6144, %s206_s14, [#allocation11], %s1756_s28, %s1756_s28, %s1757_s8  }
  0x3c   : > { %s1880_s12 = sadd.s32 1, %s1740_s27   ;;  %s35_s15 = sadd.s32 1, %s1736_s26 }
  0x3d   : > { %s32_s13 = ssub.s32 %s1740_s27, %s1880_s12  ;;  %p42_p6 = scmp.ne.s32.totalorder %s1736_s26, %s1732_s25 }
  0x3e   : > { %p33_p4 = scmp.eq.s32.totalorder %s32_s13, 0  ;;  %p43_p12 = scmp.eq.s32.totalorder %s1740_s27, 0 }
  0x3f   : > { %p1403_p0 = scmp.lt.s32.totalorder %s1740_s27, 2  ;;  %p2055_p3 = scmp.eq.s32.totalorder %s1821_s0, 1 }
  0x40   : > { %s1890_s16 = scalar_select %p33_p4, %s1736_s26, %s35_s15  }
  0x41   : > { %p44_p5 = por %p43_p12, %p42_p6  ;;  %p1894_p10 = por %p2055_p3, %p42_p6 }
  0x42   : > { %s222_s10 = sand.u32 1, %s1736_s26   ;;  %s1205_s18 = sshll.u32 %s1740_s27, 7 }
  0x43   : > { %s2056_s17 = scalar_select %p1894_p10, 1, 0 }
  0x44   : > { %s1204_s14 = sshll.u32 %s222_s10, 3  ;;  %s1903_s21 = scalar_lea.hbm %s2041_s1, %s1205_s18 }
  0x45   : > { %s226_s22 = scalar_lea.vmem [#allocation4], %s1204_s14  ;;  %p1905_p11 = pnand %p1403_p0, %p44_p5 }
  0x46   : > { %s233_s23 = sshll.u32 %s226_s22, 4  ;;  %s223_s8 = scalar_lea.sflag [#allocation5], %s222_s10  ;;  %s234_s23 = int_to_ptr.vmem [resolvable:$true] %s233_s23 }
  0x47   : > { %s1630_s9 = scalar_lea.hbm %s1903_s21, 128  ;;  %p1632_p1 = pneg %p1905_p11 }
  0x48   : > { %p1631_p7 = scmp.ne.s32.totalorder %s1903_s21, %s1630_s9  ;;  %s1635_s15 = scalar_lea.hbm %s2041_s1, 256 }
  0x49   : > { %p1636_p2 = scmp.lt.s32.totalorder %s1903_s21, %s2041_s1  ;;  %p1637_p4 = scmp.lt.s32.totalorder %s1635_s15, %s1630_s9 }
  0x4a   : > { %p1633_p9 = pnand %p1632_p1, %p1631_p7 }
  0x4b   : > { %p1638_p6 = por %p1637_p4, %p1636_p2 }
  0x4c   : > { %p1634_p13 = pneg %p1633_p9 }
  0x4e   : > { %p1639_p12 = pnand %p1638_p6, %p1634_p13 }
  0x50   : > { %1642 = shalt.err (!%p1639_p12)
}
  0x51   : > { %s1643_s19 = scalar_lea.vmem %s234_s23, 128  ;;  %s1758_s10 = smov [#allocation4]  }
  0x52   : > { %p1644_p0 = scmp.ne.s32.totalorder %s234_s23, %s1643_s19  ;;  %s1648_s20 = sshll.u32 %s1758_s10, 4  ;;  %s1649_s20 = int_to_ptr.vmem [resolvable:$false] %s1648_s20 }
  0x53   : > { %s1650_s22 = scalar_lea.vmem %s1649_s20, 256  ;;  %p1651_p7 = scmp.lt.s32.totalorder %s234_s23, %s1649_s20 }
  0x54   : > { %p1646_p5 = pnand %p1644_p0, %p1632_p1  ;;  %p1652_p9 = scmp.lt.s32.totalorder %s1650_s22, %s1643_s19 }
  0x56   : > { %p1647_p3 = pneg %p1646_p5  ;;  %p1653_p10 = por %p1652_p9, %p1651_p7 }
  0x58   : > { %p1654_p8 = pnand %p1653_p10, %p1647_p3 }
  0x5a   : > { %1657 = shalt.err (!%p1654_p8)
}
  0x5b   : > { %1395 = dma.hbm_to_vmem [thread:$0]  (!%p1905_p11), %s1903_s21, 128, %s234_s23, %s223_s8  }
  0x5c   : > { %p2058_p13 = scmp.ne.s32.totalorder %s2053_s7, 0 }
  0x5d   : > { %s1926_s9 = sand.u32 (!%p2058_p13), 1, %s1732_s25   ;;  %p2059_p10 = scmp.ne.s32.totalorder (!%p2058_p13), %s2051_s29, 0 }
  0x5e   : > { %242 = sbr.rel (%p2058_p13) target bundleno = 624 (0x270), region = 40  ;;  %s1207_s11 = sshll.u32 (!%p2058_p13), %s1926_s9, 3 }
  0x5f   : > { %s245_s13 = scalar_lea.sflag (!%p2058_p13), [#allocation5], %s1926_s9  ;;  %s248_s15 = scalar_lea.vmem (!%p2058_p13), [#allocation4], %s1207_s11 }
  0x63   : > { %1711 = dma.done.wait (%p2059_p10), %s245_s13, 128  }
  0x64   : > { %1713 = vsyncadd (%p2059_p10), %s245_s13, 4294967168  ;;  %p2060_p8 = scmp.eq.s32.totalorder %s1821_s0, 0 }
  0x66   : > { %1715 = dma.done.wait (%p2060_p8), [#allocation8], 1632   ;;  %p2061_p11 = pmov %p2060_p8 }
  0x67   : > { %p2062_p1 = pmov %p2060_p8 }
  0x68   : > { %1717 = vsyncadd (%p2061_p11), [#allocation8], 4294965664 }
  0x69   : > { %1719 = dma.done.wait (%p2062_p1), [#allocation11], 6144   ;;  %p2063_p2 = pmov %p2062_p1 }
  0x6a   : > { %v1759_v0 = vmov 0   ;;  %v1466_v1 = vld [vmem:[#allocation7 + $0x34] ss:$24 sps:$4 sm:$0xff]   ;;  %v1468_v2 = vld [vmem:[#allocation7 + $0x30] ss:$24 sps:$4 sm:$0xff]   ;;  %vm394_vm0 = vcmask 261120   ;;  %v304_v15 = vlaneseq }
  0x6b   : > { %1721 = vsyncadd (%p2063_p2), [#allocation11], 4294961152  ;;  %430 = vmatprep.mubr.bf16.mxu0 %v1759_v0  ;;  %410 = vmatprep.subr.bf16.mxu0 %v1466_v1  ;;  %v1469_v3 = vld [vmem:[#allocation7 + $0x4] ss:$24 sps:$4 sm:$0xff]   ;;  %v1471_v4 = vld [vmem:[#allocation7] ss:$24 sps:$4 sm:$0xff]  }
  0x6c   : > { %411 = vmatpush1.bf16.msra.mxu0 %v1468_v2  ;;  %v288_v5 = vld [vmem:[%s248_s15] sm:$0xff]  ;;  %v1477_v9 = vld [vmem:[#allocation7 + $0xc] ss:$24 sps:$4 sm:$0xff]   ;;  %v1475_v10 = vld [vmem:[#allocation7 + $0x8] ss:$24 sps:$4 sm:$0xff]   ;;  %v305_v16 = vshrl.u32 %v304_v15, 7 }
  0x6d   : > { %412 = vmatprep.subr.bf16.mxu0 %v1469_v3  ;;  %v1474_v6 = vld [vmem:[#allocation7 + $0x3c] ss:$24 sps:$4 sm:$0xff]   ;;  %v289_v7 = vpack.c.bf16 %v288_v5, %v288_v5  ;;  %v1472_v8 = vld [vmem:[#allocation7 + $0x38] ss:$24 sps:$4 sm:$0xff]   ;;  %s1227_s29 = sshll.u32 %s1821_s0, 3  ;;  %s1964_s7 = scalar_lea.vmem [#allocation12], %s1207_s11 }
  0x6e   : > { %v1480_v11 = vld [vmem:[#allocation7 + $0x44] ss:$24 sps:$4 sm:$0xff]   ;;  %v1478_v12 = vld [vmem:[#allocation7 + $0x40] ss:$24 sps:$4 sm:$0xff]   ;;  %v1483_v13 = vld [vmem:[#allocation7 + $0x14] ss:$24 sps:$4 sm:$0xff]   ;;  %v530_v17 = vstv %s1227_s29 }
  0x6f   : > { %v1481_v14 = vld [vmem:[#allocation7 + $0x10] ss:$24 sps:$4 sm:$0xff]   ;;  %v1948_v18 = vadd.s32 %v530_v17, %v305_v16  ;;  %v306_v19 = vsub.s32 0, %v305_v16  ;;  %v302_v20 = vld [vmem:[#allocation9] sm:$0x3f]  ;;  %v310_v21 = vsub.s32 1, %v305_v16 }
  0x70   : > { %413 = vmatpush1.bf16.msra.mxu0 %v1471_v4  ;;  %v314_v26 = vsub.s32 2, %v305_v16  ;;  %v318_v29 = vsub.s32 3, %v305_v16  ;;  %v322_v36 = vsub.s32 4, %v305_v16  ;;  %v326_v39 = vsub.s32 5, %v305_v16  ;;  %s1746_s21 = smov 0  }
  0x71   : > { %451 = vmatprep.subr.bf16.mxu0 %v1474_v6  ;;  %v307_v22 = vrot.slane %v302_v20, %v306_v19  ;;  %v311_v23 = vrot.slane %v302_v20, %v310_v21  ;;  %v1742_v56 = vmov 0  }
  0x72   : > { %v315_v31 = vrot.slane %v302_v20, %v314_v26  ;;  %v319_v33 = vrot.slane %v302_v20, %v318_v29  ;;  %v323_v41 = vrot.slane %v302_v20, %v322_v36  ;;  %v327_v43 = vrot.slane %v302_v20, %v326_v39 }
  0x73   : > { %1224 = vmatmul.mubr.msk.bf16.vlgmr.msra.gmra.mxu0 %vm394_vm0, %v289_v7 }
  0x74   : > { %452 = vmatpush1.bf16.msra.mxu0 %v1472_v8  ;;  %471 = vmatprep.mubr.bf16.mxu0 %v1759_v0 }
  0x75   : > { %453 = vmatprep.subr.bf16.mxu0 %v1477_v9 }
  0x78   : > { %454 = vmatpush1.bf16.msra.mxu0 %v1475_v10 }
  0x79   : > { %492 = vmatprep.subr.bf16.mxu0 %v1480_v11 }
  0x7b   : > { %1225 = vmatmul.mubr.msk.bf16.vlgmr.msra.gmra.mxu0 %vm394_vm0, %v289_v7 }
  0x7c   : > { %493 = vmatpush1.bf16.msra.mxu0 %v1478_v12  ;;  %512 = vmatprep.mubr.bf16.mxu0 %v1759_v0 }
  0x7d   : > { %494 = vmatprep.subr.bf16.mxu0 %v1483_v13 }
  0x80   : > { %495 = vmatpush1.bf16.msra.mxu0 %v1481_v14 }
  0x83   : > { %1226 = vmatmul.mubr.msk.bf16.vlgmr.msra.gmra.mxu0 %vm394_vm0, %v289_v7 }
 0x133   : > { %v432_v24 = vpop.f32.mrf.mxu0 }
 0x134   : > { %v433_v25 = vadd.f32 %v432_v24, %v307_v22 }
 0x135   : > { %v434_v27 = vpop.f32.mrf.mxu0 }
 0x136   : > { %1484 = vtanh.f32 %v433_v25  ;;  %v435_v28 = vadd.f32 %v434_v27, %v311_v23 }
 0x137   : > { %v436_v30 = vpop.f32.mrf.mxu0 }
 0x138   : > { %1486 = vtanh.f32 %v435_v28 }
 0x139   : > { %v437_v32 = vpop.f32.mrf.mxu0 }
 0x13b   : > { %v473_v34 = vpop.f32.mrf.mxu0 }
 0x13c   : > { %v474_v35 = vadd.f32 %v473_v34, %v315_v31 }
 0x13d   : > { %v475_v37 = vpop.f32.mrf.mxu0 }
 0x13e   : > { %1488 = vtanh.f32 %v474_v35  ;;  %v476_v38 = vadd.f32 %v475_v37, %v319_v33 }
 0x13f   : > { %v477_v40 = vpop.f32.mrf.mxu0 }
 0x140   : > { %1490 = vtanh.f32 %v476_v38 }
 0x141   : > { %v478_v42 = vpop.f32.mrf.mxu0 }
 0x143   : > { %v1950_v44 = vpop.eup %1484  ;;  %v514_v45 = vpop.f32.mrf.mxu0 }
 0x144   : > { %v515_v46 = vadd.f32 %v514_v45, %v323_v41 }
 0x145   : > { %v1952_v47 = vpop.eup %1486  ;;  %v516_v48 = vpop.f32.mrf.mxu0 }
 0x146   : > { %1492 = vtanh.f32 %v515_v46  ;;  %v517_v49 = vadd.f32 %v516_v48, %v327_v43 }
 0x147   : > { %v518_v50 = vpop.f32.mrf.mxu0 }
 0x148   : > { %1494 = vtanh.f32 %v517_v49 }
 0x149   : > { %v519_v51 = vpop.f32.mrf.mxu0 }
 0x14b   : > { %v1954_v52 = vpop.eup %1488 }
 0x14d   : > { %v1956_v53 = vpop.eup %1490 }
 0x153   : > { %v1958_v54 = vpop.eup %1492 }
 0x155   : > { %v1960_v55 = vpop.eup %1494 }
 0x156 LB: >> { %s1228_s23 = sshll.u32 %s1748_s21, 3  ;;  %s542_s28 = sld [smem:[#allocation3 + %s1748_s21]]  ;;  %v1760_v59 = vmov 0   ;;  %s1748_s21 = sphi %s1746_s21, %s537_s21   ;;  %v1744_v56 = vphi %v1742_v56, %v1743_v56  }
 0x157   : >> { %v540_v57 = vstv %s1228_s23  ;;  %s537_s21 = sadd.s32 1, %s1748_s21  }
 0x158   : >> { %vm541_vm1 = vcmp.ge.s32.totalorder %v1948_v18, %v540_v57  ;;  %p534_p4 = scmp.ge.s32.totalorder %s537_s21, 2  }
 0x159   : > { %v1496_v62 = vld [vmem:[#allocation10 + $0x78] sm:$0xff] (%p534_p4)   ;;  %v1500_v2 = vld [vmem:[#allocation10 + $0x70] sm:$0xff] (%p534_p4)   ;;  %v1504_v6 = vld [vmem:[#allocation10 + $0x68] sm:$0xff] (%p534_p4)   ;;  %v1279_v27 = vpack.c.bf16 (%p534_p4), %v1952_v47, %v1952_v47  ;;  %v1285_v29 = vpack.c.bf16 (%p534_p4), %v1956_v53, %v1956_v53  ;;  %v1282_v31 = vpack.c.bf16 (%p534_p4), %v1950_v44, %v1950_v44  ;;  %v1291_v33 = vpack.c.bf16 (%p534_p4), %v1960_v55, %v1960_v55  ;;  %s1297_s19 = sshll.u32 (%p534_p4), %s1821_s0, 7  ;;  %s1091_s10 = sshll.u32 (%p534_p4), %s1964_s7, 4  ;;  %s1092_s10 = int_to_ptr.vmem [resolvable:$true] %s1091_s10 }
 0x15a   : > { %v1497_v63 = vld [vmem:[#allocation10 + $0x38] sm:$0xff] (%p534_p4)   ;;  %1300 = vmatprep.subr.bf16.mxu1 (%p534_p4), %v1496_v62  ;;  %v1501_v3 = vld [vmem:[#allocation10 + $0x30] sm:$0xff] (%p534_p4)   ;;  %v1505_v7 = vld [vmem:[#allocation10 + $0x28] sm:$0xff] (%p534_p4)   ;;  %v1288_v36 = vpack.c.bf16 (%p534_p4), %v1954_v52, %v1954_v52  ;;  %v1294_v52 = vpack.c.bf16 (%p534_p4), %v1958_v54, %v1958_v54  ;;  %s1089_s11 = scalar_lea.hbm (%p534_p4), %s2046_s6, %s1297_s19  ;;  %s1078_s13 = scalar_lea.sflag (%p534_p4), [#allocation6], %s1926_s9 }
 0x15b   : > { %v1498_v0 = vld [vmem:[#allocation10 + $0xf8] sm:$0xff] (%p534_p4)   ;;  %1301 = vmatpush3.bf16.msra.mxu1 (%p534_p4), %v1497_v63  ;;  %v1502_v4 = vld [vmem:[#allocation10 + $0xf0] sm:$0xff] (%p534_p4)   ;;  %v1506_v8 = vld [vmem:[#allocation10 + $0xe8] sm:$0xff] (%p534_p4)   ;;  %s1658_s15 = scalar_lea.vmem (%p534_p4), %s1092_s10, 128  ;;  %p2067_p12 = scmp.ne.s32.totalorder (%p534_p4), %s2056_s17, 0 }
 0x15c   : >> { %s543_s8 = sadd.s32 %s1228_s23, %s542_s28  ;;  %v1499_v1 = vld [vmem:[#allocation10 + $0xb8] sm:$0xff] (%p534_p4)   ;;  %1322 = vmatprep.subr.bf16.mxu0 (%p534_p4), %v1498_v0  ;;  %1302 = vmatprep.subr.bf16.mxu1 (%p534_p4), %v1500_v2  ;;  %v1503_v5 = vld [vmem:[#allocation10 + $0xb0] sm:$0xff] (%p534_p4)   ;;  %v1507_v9 = vld [vmem:[#allocation10 + $0xa8] sm:$0xff] (%p534_p4)   ;;  %p1659_p6 = scmp.ne.s32.totalorder (%p534_p4), %s1092_s10, %s1658_s15 }
 0x15d   : >> { %v544_v58 = vstv %s543_s8  ;;  %1323 = vmatpush3.bf16.msra.mxu0 (%p534_p4), %v1499_v1  ;;  %v1508_v10 = vld [vmem:[#allocation10 + $0x60] sm:$0xff] (%p534_p4)   ;;  %v1512_v14 = vld [vmem:[#allocation10 + $0x58] sm:$0xff] (%p534_p4)   ;;  %v1517_v19 = vld [vmem:[#allocation10 + $0x10] sm:$0xff] (%p534_p4)   ;;  %s1761_s29 = smov (%p534_p4), [#allocation12]  }
 0x15e   : >> { %vm545_vm2 = vcmp.lt.s32.totalorder %v1948_v18, %v544_v58  ;;  %1324 = vmatprep.subr.bf16.mxu0 (%p534_p4), %v1502_v4  ;;  %v1509_v11 = vld [vmem:[#allocation10 + $0x20] sm:$0xff] (%p534_p4)   ;;  %v1513_v15 = vld [vmem:[#allocation10 + $0x18] sm:$0xff] (%p534_p4)   ;;  %v1516_v18 = vld [vmem:[#allocation10 + $0x50] sm:$0xff] (%p534_p4)   ;;  %p1660_p0 = pnand (%p534_p4), %p1659_p6, %p2067_p12  ;;  %s1662_s21 = sshll.u32 (%p534_p4), %s1761_s29, 4  ;;  %s1663_s21 = int_to_ptr.vmem [resolvable:$false] %s1662_s21 }
 0x15f   : >> { %vm546_vm3 = vmand %vm541_vm1, %vm545_vm2  ;;  %1303 = vmatpush3.bf16.msra.mxu1 (%p534_p4), %v1501_v3  ;;  %v1510_v12 = vld [vmem:[#allocation10 + $0xe0] sm:$0xff] (%p534_p4)   ;;  %v1514_v16 = vld [vmem:[#allocation10 + $0xd8] sm:$0xff] (%p534_p4)   ;;  %s1664_s0 = scalar_lea.vmem (%p534_p4), %s1663_s21, 256  ;;  %p1665_p3 = scmp.lt.s32.totalorder (%p534_p4), %s1092_s10, %s1663_s21 }
 0x160   : >> { %v547_v60 = vsel %vm546_vm3, 1, %v1760_v59  ;;  %536 = sbr.rel (!%p534_p4) target bundleno = 342 (0x156), region = 104  ;;  %1304 = vmatprep.subr.bf16.mxu1 (%p534_p4), %v1504_v6  ;;  %v1511_v13 = vld [vmem:[#allocation10 + $0xa0] sm:$0xff] (%p534_p4)   ;;  %v1515_v17 = vld [vmem:[#allocation10 + $0x98] sm:$0xff] (%p534_p4)   ;;  %v1518_v20 = vld [vmem:[#allocation10 + $0xd0] sm:$0xff] (%p534_p4)   ;;  %p1661_p5 = pneg (%p534_p4), %p1660_p0 }
 0x161   : >> { %v1968_v56 = vor.u32 %v1744_v56, %v547_v60   ;;  %1325 = vmatpush3.bf16.msra.mxu0 (%p534_p4), %v1503_v5  ;;  %v1519_v21 = vld [vmem:[#allocation10 + $0x90] sm:$0xff] (%p534_p4)   ;;  %v1520_v22 = vld [vmem:[#allocation10 + $0x48] sm:$0xff] (%p534_p4)   ;;  %v1524_v26 = vld [vmem:[#allocation10 + $0x40] sm:$0xff] (%p534_p4)   ;;  %p1666_p7 = scmp.lt.s32.totalorder (%p534_p4), %s1664_s0, %s1658_s15 }
 0x162   : > { %1326 = vmatprep.subr.bf16.mxu0 (%p534_p4), %v1506_v8  ;;  %v1521_v23 = vld [vmem:[#allocation10 + $0x8] sm:$0xff] (%p534_p4)   ;;  %v1525_v28 = vld [vmem:[#allocation10] sm:$0xff] (%p534_p4)   ;;  %v1528_v35 = vld [vmem:[#allocation10 + $0x178] sm:$0xff] (%p534_p4)  }
 0x163   : >> { %v2064_v61 = vmov %v1968_v56  ;;  %1305 = vmatpush3.bf16.msra.mxu1 (%p534_p4), %v1505_v7  ;;  %v1522_v24 = vld [vmem:[#allocation10 + $0xc8] sm:$0xff] (%p534_p4)   ;;  %v1526_v30 = vld [vmem:[#allocation10 + $0xc0] sm:$0xff] (%p534_p4)   ;;  %v1529_v37 = vld [vmem:[#allocation10 + $0x138] sm:$0xff] (%p534_p4)   ;;  %p1667_p9 = por (%p534_p4), %p1666_p7, %p1665_p3 }
 0x164   : >> { %v1743_v56 = vmov %v2064_v61   ;;  %1306 = vmatprep.subr.bf16.mxu1 (%p534_p4), %v1508_v10  ;;  %v1523_v25 = vld [vmem:[#allocation10 + $0x88] sm:$0xff] (%p534_p4)   ;;  %vm549_vm4 = vcmp.gt.s32.totalorder (%p534_p4), %v2064_v61, 0  ;;  %v1527_v34 = vld [vmem:[#allocation10 + $0x80] sm:$0xff] (%p534_p4)   ;;  %v1530_v38 = vld [vmem:[#allocation10 + $0x170] sm:$0xff] (%p534_p4)  }
 0x165   : > { %1327 = vmatpush3.bf16.msra.mxu0 %v1507_v9  ;;  %vm1978_vm5 = vmpackc.low %vm549_vm4, %vm549_vm4  ;;  %v1531_v39 = vld [vmem:[#allocation10 + $0x130] sm:$0xff]   ;;  %v1532_v40 = vld [vmem:[#allocation10 + $0x168] sm:$0xff]   ;;  %p1668_p13 = pnand %p1667_p9, %p1661_p5 }
 0x166   : > { %1328 = vmatprep.subr.bf16.mxu0 %v1510_v12  ;;  %1280 = vmatprep.mubr.msk.bf16.mxu1 %vm1978_vm5, %v1279_v27  ;;  %v1533_v41 = vld [vmem:[#allocation10 + $0x128] sm:$0xff]   ;;  %v1534_v42 = vld [vmem:[#allocation10 + $0x160] sm:$0xff]   ;;  %v1536_v44 = vld [vmem:[#allocation10 + $0x158] sm:$0xff]  }
 0x167   : > { %1307 = vmatpush3.bf16.msra.mxu1 %v1509_v11  ;;  %1286 = vmatprep.mubr.msk.bf16.mxu0 %vm1978_vm5, %v1285_v29  ;;  %v1535_v43 = vld [vmem:[#allocation10 + $0x120] sm:$0xff]   ;;  %v1537_v45 = vld [vmem:[#allocation10 + $0x118] sm:$0xff]   ;;  %v1538_v46 = vld [vmem:[#allocation10 + $0x150] sm:$0xff]  }
 0x168   : > { %1308 = vmatprep.subr.bf16.mxu1 %v1512_v14  ;;  %v1539_v47 = vld [vmem:[#allocation10 + $0x110] sm:$0xff]   ;;  %v1540_v48 = vld [vmem:[#allocation10 + $0x148] sm:$0xff]   ;;  %v1542_v50 = vld [vmem:[#allocation10 + $0x140] sm:$0xff]  }
 0x169   : > { %1329 = vmatpush3.bf16.msra.mxu0 %v1511_v13  ;;  %v1541_v49 = vld [vmem:[#allocation10 + $0x108] sm:$0xff]   ;;  %v1543_v51 = vld [vmem:[#allocation10 + $0x100] sm:$0xff]  }
 0x16a   : > { %1330 = vmatprep.subr.bf16.mxu0 %v1514_v16  ;;  %v1229_v54 = vld [vmem:[%s2045_s5] ss:$0 sm:$0xff] }
 0x16b   : > { %1309 = vmatpush3.bf16.msra.mxu1 %v1513_v15 }
 0x16c   : > { %1310 = vmatprep.subr.bf16.mxu1 %v1516_v18 }
 0x16d   : > { %1331 = vmatpush3.bf16.msra.mxu0 %v1515_v17 }
 0x16e   : > { %1332 = vmatprep.subr.bf16.mxu0 %v1518_v20 }
 0x16f   : > { %1311 = vmatpush3.bf16.msra.mxu1 %v1517_v19 }
 0x170   : > { %1312 = vmatprep.subr.bf16.mxu1 %v1520_v22 }
 0x171   : > { %1333 = vmatpush3.bf16.msra.mxu0 %v1519_v21 }
 0x172   : > { %1334 = vmatprep.subr.bf16.mxu0 %v1522_v24 }
 0x173   : > { %1313 = vmatpush3.bf16.msra.mxu1 %v1521_v23 }
 0x174   : > { %1314 = vmatprep.subr.bf16.mxu1 %v1524_v26 }
 0x175   : > { %1335 = vmatpush3.bf16.msra.mxu0 %v1523_v25 }
 0x176   : > { %1336 = vmatprep.subr.bf16.mxu0 %v1526_v30 }
 0x177   : > { %1315 = vmatpush3.bf16.msra.mxu1 %v1525_v28 }
 0x178   : > { %1344 = vmatprep.subr.bf16.mxu1 %v1528_v35 }
 0x179   : > { %1337 = vmatpush3.bf16.msra.mxu0 %v1527_v34 }
 0x17a   : > { %1283 = vmatmul.mubr.msk.bf16.vlgmr.msra.gmra.mxu1 %vm1978_vm5, %v1282_v31 }
 0x17b   : > { %1292 = vmatprep.mubr.msk.bf16.mxu1 %vm1978_vm5, %v1291_v33  ;;  %1345 = vmatpush3.bf16.msra.mxu1 %v1529_v37 }
 0x17c   : > { %1289 = vmatmul.mubr.msk.bf16.vlgmr.msra.gmra.mxu0 %vm1978_vm5, %v1288_v36  ;;  %1346 = vmatprep.subr.bf16.mxu1 %v1530_v38 }
 0x17f   : > { %1347 = vmatpush3.bf16.msra.mxu1 %v1531_v39 }
 0x180   : > { %1348 = vmatprep.subr.bf16.mxu1 %v1532_v40 }
 0x183   : > { %1349 = vmatpush3.bf16.msra.mxu1 %v1533_v41 }
 0x184   : > { %1350 = vmatprep.subr.bf16.mxu1 %v1534_v42 }
 0x187   : > { %1351 = vmatpush3.bf16.msra.mxu1 %v1535_v43 }
 0x188   : > { %1352 = vmatprep.subr.bf16.mxu1 %v1536_v44 }
 0x18b   : > { %1353 = vmatpush3.bf16.msra.mxu1 %v1537_v45 }
 0x18c   : > { %1354 = vmatprep.subr.bf16.mxu1 %v1538_v46 }
 0x18f   : > { %1355 = vmatpush3.bf16.msra.mxu1 %v1539_v47 }
 0x190   : > { %1356 = vmatprep.subr.bf16.mxu1 %v1540_v48 }
 0x193   : > { %1357 = vmatpush3.bf16.msra.mxu1 %v1541_v49 }
 0x194   : > { %1358 = vmatprep.subr.bf16.mxu1 %v1542_v50 }
 0x197   : > { %1359 = vmatpush3.bf16.msra.mxu1 %v1543_v51 }
 0x19a   : > { %1295 = vmatmul.mubr.msk.bf16.vlgmr.msra.gmra.mxu1 %vm1978_vm5, %v1294_v52 }
 0x23a   : > { %v1316_v53 = vpop.f32.mrf.mxu1 }
 0x23c   : > { %v1317_v55 = vpop.f32.mrf.mxu1  ;;  %v1338_v56 = vpop.f32.mrf.mxu0 }
 0x23d   : > { %v1318_v62 = vadd.f32 %v1317_v55, %v1316_v53 }
 0x23e   : > { %v1319_v57 = vpop.f32.mrf.mxu1  ;;  %v1339_v58 = vpop.f32.mrf.mxu0 }
 0x23f   : > { %v990_v63 = vadd.f32 %v1318_v62, %v1229_v54  ;;  %v1340_v0 = vadd.f32 %v1339_v58, %v1338_v56 }
 0x240   : > { %v1320_v59 = vpop.f32.mrf.mxu1  ;;  %v1341_v60 = vpop.f32.mrf.mxu0 }
 0x241   : > { %v1030_v3 = vadd.f32 %v1340_v0, %v990_v63 }
 0x242   : > { %v1342_v61 = vpop.f32.mrf.mxu0 }
 0x25a   : > { %v1360_v1 = vpop.f32.mrf.mxu1 }
 0x25c   : > { %v1361_v2 = vpop.f32.mrf.mxu1 }
 0x25d   : > { %v1362_v4 = vadd.f32 %v1361_v2, %v1360_v1 }
 0x25e   : > { %v1363_v5 = vpop.f32.mrf.mxu1 }
 0x25f   : > { %v1070_v6 = vadd.f32 %v1362_v4, %v1030_v3 }
 0x260   : > { %v1364_v7 = vpop.f32.mrf.mxu1 }
 0x261   : > { %v1075_v8 = vmax.f32 %v1070_v6, 0.0 }
 0x263   : > { %1076 = vst [vmem:[%s1964_s7] sm:$0xff] %v1075_v8 }
 0x264   : > { %1671 = shalt.err (!%p1668_p13)
}
 0x265   : > { %s1672_s23 = scalar_lea.hbm %s1089_s11, 128  ;;  %s1676_s28 = scalar_lea.hbm %s2046_s6, 256 }
 0x266   : > { %p1673_p10 = scmp.ne.s32.totalorder %s1089_s11, %s1672_s23  ;;  %p1677_p1 = scmp.lt.s32.totalorder %s1089_s11, %s2046_s6 }
 0x267   : > { %p1678_p2 = scmp.lt.s32.totalorder %s1676_s28, %s1672_s23 }
 0x268   : > { %p1674_p8 = pnand %p1673_p10, %p2067_p12 }
 0x269   : > { %p1679_p4 = por %p1678_p2, %p1677_p1 }
 0x26a   : > { %p1675_p11 = pneg %p1674_p8 }
 0x26c   : > { %p1680_p6 = pnand %p1679_p4, %p1675_p11 }
 0x26e   : > { %1683 = shalt.err (!%p1680_p6)
}
 0x26f   : > { %1380 = dma.vmem_to_hbm [thread:$0]  (%p2067_p12), %s1092_s10, 128, %s1089_s11, %s1078_s13  }
 0x270 PF: > { %s1103_s14 = sand.u32 1, %s1728_s24   ;;  %p2068_p0 = scmp.ne.s32.totalorder %s2052_s30, 0 }
 0x271   : > { %p2069_p5 = scmp.ge.s32.totalorder %s1740_s27, 2  ;;  %s1104_s19 = scalar_lea.sflag [#allocation6], %s1103_s14 }
 0x273   : > { %p1397_p3 = pnand %p2069_p5, %p2068_p0 }
 0x275   : > { %p1398_p7 = pneg %p1397_p3 }
 0x277   : > { %1723 = dma.done.wait (%p1398_p7), %s1104_s19, 128  }
 0x278   : > { %1725 = vsyncadd (%p1398_p7), %s1104_s19, 4294967168  ;;  %p25_p9 = scmp.ge.s32.totalorder %s1880_s12, 4   ;;  %s2070_s24 = smov %s1732_s25 }
 0x279   : > { %s2071_s25 = smov %s1736_s26  ;;  %s2072_s26 = smov %s1890_s16 }
 0x27a   : > { %s2073_s27 = smov %s1880_s12  ;;  %27 = sbr.rel (!%p25_p9) target bundleno = 12 (0xc), region = 115 }
 0x27f   :  { %1109 = vsyncpa [#allocation5], 1 }
 0x280   :  { %1111 = vsyncpa [#allocation5 + $0x1], 1 }
 0x281   :  { %1112 = vsyncpa [#allocation8], 1 }
 0x282   :  { %1113 = vsyncpa [#allocation11], 1 }
 0x283   :  { %1114 = vsyncpa [#allocation6], 1 }
 0x284   :  { %1116 = vsyncpa [#allocation6 + $0x1], 1 }

</bundles_post_ra>
